<compile_context>
chip_gen: v6e
topology: v6e:2x2x1
jax: 0.10.0
libtpu: 0.0.40
codegen_flags: <defaults>
</compile_context>

<pallas_src>
import math
from functools import partial

import jax
import jax.numpy as jnp
from jax import lax
from jax.experimental import pallas as pl
from jax.experimental.pallas import tpu as pltpu

LN_EPS = 1e-5                   # config.layer_norm_epsilon
PRESENT_DTYPE = jnp.bfloat16    # KV writeback dtype (halves KV HBM traffic)
COMPUTE_DTYPE = jnp.bfloat16    # MXU input dtype; accumulation is f32


def _vmem_limit_bytes():
    """Scoped-VMEM budget ≈ 3/4 of physical, capped at 96 MiB.
    v7x (64 MiB physical) -> 48 MiB; v5e/v6e (128 MiB) -> 96 MiB."""
    cap = 128 * 1024 * 1024
    try:
        cap = int(getattr(pltpu.get_tpu_info(), "vmem_capacity_bytes", cap))
    except Exception:
        pass
    return max(32 * 1024 * 1024, min(96 * 1024 * 1024, (cap * 3) // 4))


def _pick_heads_per_group(n_head, seq_len, budget_bytes=8 * 1024 * 1024):
    """Largest head-group size whose f32 (hpg, S, S) score block stays under
    budget_bytes (and divides n_head). Caps live attention VMEM so the kernel
    fits v7x's 64 MiB even at GPT-2-small sizes (H=12, S=1024 -> hpg=2)."""
    per_head = seq_len * seq_len * 4
    hpg = max(1, min(n_head, budget_bytes // max(per_head, 1)))
    while n_head % hpg:
        hpg -= 1
    return hpg


def _layernorm(x, g, b, eps=LN_EPS):
    u = jnp.mean(x, axis=-1, keepdims=True)
    xc = x - u
    s = jnp.mean(xc * xc, axis=-1, keepdims=True)
    return xc * lax.rsqrt(s + eps) * g + b      # rsqrt -> EUP slot


def _gelu(x):
    # GPT-2 tanh gelu (matches the reference repo's gelu())
    return 0.5 * x * (1.0 + jnp.tanh(math.sqrt(2.0 / math.pi)
                                     * (x + 0.044715 * x ** 3)))


def _block_kernel(x_ref, pres_in_ref, ln1g, ln1b, aw, ab, pw, pb,
                  ln2g, ln2b, fw, fb, mw, mb, *rest,
                  n_head, heads_per_group, fuse_lnf):
    if fuse_lnf:
        lnfg, lnfb, out_ref, pres_ref = rest
    else:
        lnfg = lnfb = None
        out_ref, pres_ref = rest
    del pres_in_ref  # aliased output buffer; never read inside the kernel

    x = x_ref[0]                              # (S, E) f32, current batch element
    S, E = x.shape
    H = n_head
    Dh = E // H
    hpg = heads_per_group
    G = H // hpg
    cdt = COMPUTE_DTYPE
    scale = 1.0 / math.sqrt(Dh)

    # ----- attention -----
    h = _layernorm(x, ln1g[0], ln1b[0])
    qkv = jnp.dot(h.astype(cdt), aw[...],
                  preferred_element_type=jnp.float32) + ab[0]        # (S, 3E) f32

    k_slab = qkv[:, E:2 * E]                  # (S, E)
    v_slab = qkv[:, 2 * E:3 * E]              # (S, E)

    # lane-dense, bf16 present write straight into the aliased (L,2,B,S,E) buf
    pres_ref[0, 0, 0] = k_slab.astype(pres_ref.dtype)   # == key.transpose(-2,-1)
    pres_ref[0, 1, 0] = v_slab.astype(pres_ref.dtype)

    # fold 1/sqrt(Dh) into q: S*E muls instead of H*S^2
    q_slab = qkv[:, :E] * scale                                       # (S, E)

    row = lax.broadcasted_iota(jnp.int32, (S, S), 0)
    col = lax.broadcasted_iota(jnp.int32, (S, S), 1)
    causal = (col <= row)                                             # (S, S) bool

    # Process heads in groups so live scores stay (hpg, S, S) f32 (v7x-safe).
    ctx_parts = []
    for g in range(G):
        c0 = g * hpg * Dh
        c1 = c0 + hpg * Dh
        # GPT-2 c_attn columns are already head-major -> contiguous slices.
        qg = jnp.swapaxes(q_slab[:, c0:c1].reshape(S, hpg, Dh), 0, 1).astype(cdt)
        kg = jnp.swapaxes(k_slab[:, c0:c1].reshape(S, hpg, Dh), 0, 1).astype(cdt)
        vg = jnp.swapaxes(v_slab[:, c0:c1].reshape(S, hpg, Dh), 0, 1).astype(cdt)

        s = jnp.einsum('hqd,hkd->hqk', qg, kg,
                       preferred_element_type=jnp.float32)            # (hpg,S,S)
        s = jnp.where(causal[None, :, :], s, -1e10)                   # causal mask

        m = jnp.max(s, axis=-1, keepdims=True)
        p = jnp.exp(s - m)
        denom = jnp.sum(p, axis=-1, keepdims=True)
        p = p * pl.reciprocal(denom, approx=True)                     # EUP divide

        cg = jnp.einsum('hqk,hkd->hqd', p.astype(cdt), vg,
                        preferred_element_type=jnp.float32)           # (hpg,S,Dh)
        ctx_parts.append(jnp.swapaxes(cg, 0, 1).reshape(S, hpg * Dh))
    a = ctx_parts[0] if G == 1 else jnp.concatenate(ctx_parts, axis=-1)  # (S,E)

    a = jnp.dot(a.astype(cdt), pw[...],
                preferred_element_type=jnp.float32) + pb[0]
    x = x + a

    # ----- MLP -----
    h2 = _layernorm(x, ln2g[0], ln2b[0])
    mlp = jnp.dot(h2.astype(cdt), fw[...],
                  preferred_element_type=jnp.float32) + fb[0]
    mlp = _gelu(mlp)
    mlp = jnp.dot(mlp.astype(cdt), mw[...],
                  preferred_element_type=jnp.float32) + mb[0]
    x = x + mlp

    if fuse_lnf:
        x = _layernorm(x, lnfg[0], lnfb[0])                           # fused ln_f
    out_ref[0] = x


def run_block(hidden, presents_buf, layer_idx, blk, n_head, lnf=None):
    """One transformer block (+ optional fused ln_f).
    Writes this layer's KV into presents_buf[layer_idx] via aliasing.
    Returns (hidden (B,S,E) f32, presents_buf (L,2,B,S,E) bf16)."""
    B, S, E = hidden.shape
    L = presents_buf.shape[0]
    hpg = _pick_heads_per_group(n_head, S)

    # Weights are already bf16 (prepare_params); LN params & biases stay f32.
    params = [blk['ln1_g'], blk['ln1_b'],
              blk['attn_w'], blk['attn_b'],
              blk['proj_w'], blk['proj_b'],
              blk['ln2_g'], blk['ln2_b'],
              blk['fc_w'], blk['fc_b'],
              blk['mproj_w'], blk['mproj_b']]
    fuse_lnf = lnf is not None
    if fuse_lnf:
        params += [lnf[0], lnf[1]]

    in_specs = [pl.BlockSpec((1, S, E), lambda b: (b, 0, 0)),
                pl.BlockSpec(memory_space=pl.ANY)]          # aliased KV buffer
    in_specs += [pl.BlockSpec(p.shape, lambda b: (0, 0)) for p in params]
    out_specs = (pl.BlockSpec((1, S, E), lambda b: (b, 0, 0)),
                 pl.BlockSpec((1, 2, 1, S, E),
                              lambda b, li=layer_idx: (li, 0, b, 0, 0)))
    out_shape = (jax.ShapeDtypeStruct((B, S, E), jnp.float32),
                 jax.ShapeDtypeStruct((L, 2, B, S, E), PRESENT_DTYPE))

    out, presents_buf = pl.pallas_call(
        partial(_block_kernel, n_head=n_head, heads_per_group=hpg,
                fuse_lnf=fuse_lnf),
        grid=(B,),
        in_specs=in_specs,
        out_specs=out_specs,
        out_shape=out_shape,
        input_output_aliases={1: 1},    # presents_buf updated in place
        compiler_params=pltpu.CompilerParams(
            dimension_semantics=("parallel",),
            vmem_limit_bytes=_vmem_limit_bytes()),
    )(hidden, presents_buf, *params)
    return out, presents_buf


# --- standalone ln_f (only used if a stage has zero blocks) ------------------
def _lnf_kernel(x_ref, g_ref, b_ref, o_ref):
    o_ref[...] = _layernorm(x_ref[...], g_ref[0], b_ref[0])


def run_ln_f(hidden, g, b, row_block=256):
    B, S, E = hidden.shape
    R = B * S
    rb = R if R <= row_block else row_block
    out = pl.pallas_call(
        _lnf_kernel,
        grid=(pl.cdiv(R, rb),),
        in_specs=[pl.BlockSpec((rb, E), lambda i: (i, 0)),
                  pl.BlockSpec((1, E), lambda i: (0, 0)),
                  pl.BlockSpec((1, E), lambda i: (0, 0))],
        out_specs=pl.BlockSpec((rb, E), lambda i: (i, 0)),
        out_shape=jax.ShapeDtypeStruct((R, E), jnp.float32),
        compiler_params=pltpu.CompilerParams(
            dimension_semantics=("parallel",)),
    )(hidden.reshape(R, E), g, b)
    return out.reshape(B, S, E)


def init_params(key, n_layer, n_embd, n_head, vocab, n_positions):
    """f32 parameters (as they would come out of a checkpoint)."""
    keys = jax.random.split(key, 2 + n_layer)
    params = {
        'wte': 0.02 * jax.random.normal(keys[0], (vocab, n_embd), jnp.float32),
        'wpe': 0.01 * jax.random.normal(keys[1], (n_positions, n_embd), jnp.float32),
        'lnf_g': jnp.ones((1, n_embd), jnp.float32),
        'lnf_b': jnp.zeros((1, n_embd), jnp.float32),
        'blocks': [],
    }
    for i in range(n_layer):
        k = jax.random.split(keys[2 + i], 4)
        params['blocks'].append(dict(
            ln1_g=jnp.ones((1, n_embd), jnp.float32),
            ln1_b=jnp.zeros((1, n_embd), jnp.float32),
            attn_w=0.02 * jax.random.normal(k[0], (n_embd, 3 * n_embd), jnp.float32),
            attn_b=jnp.zeros((1, 3 * n_embd), jnp.float32),
            proj_w=0.02 * jax.random.normal(k[1], (n_embd, n_embd), jnp.float32),
            proj_b=jnp.zeros((1, n_embd), jnp.float32),
            ln2_g=jnp.ones((1, n_embd), jnp.float32),
            ln2_b=jnp.zeros((1, n_embd), jnp.float32),
            fc_w=0.02 * jax.random.normal(k[2], (n_embd, 4 * n_embd), jnp.float32),
            fc_b=jnp.zeros((1, 4 * n_embd), jnp.float32),
            mproj_w=0.02 * jax.random.normal(k[3], (4 * n_embd, n_embd), jnp.float32),
            mproj_b=jnp.zeros((1, n_embd), jnp.float32),
        ))
    return params


def prepare_params(params):
    """One-time parameter prep: cast the four matmul weights per block to bf16
    (stored bf16 in HBM), keep LN params / biases / embeddings in f32."""
    prepped = dict(params)
    prepped['blocks'] = []
    for blk in params['blocks']:
        b = dict(blk)
        for name in ('attn_w', 'proj_w', 'fc_w', 'mproj_w'):
            b[name] = blk[name].astype(COMPUTE_DTYPE)
        prepped['blocks'].append(b)
    return prepped


def gpt2_stage_forward(params, input_ids, n_head, convert_present_layout=True):
    """Single-stage forward (layer_st=0, layer_last=n_layer): embeddings ->
    blocks -> ln_f (fused into last block).
    Returns (hidden_states (B,S,E) f32, presents).  With
    convert_present_layout=True presents is (L,2,B,H,S,Dh) (reference layout),
    otherwise the lane-dense merged (L,2,B,S,E) kernel layout is returned."""
    B, S = input_ids.shape
    E = params['wte'].shape[1]
    # position_ids = arange(0, S) expanded to (B, S); past=None -> past_length=0
    position_ids = jnp.broadcast_to(jnp.arange(S, dtype=jnp.int32)[None, :], (B, S))
    hidden = (jnp.take(params['wte'], input_ids, axis=0)
              + jnp.take(params['wpe'], position_ids, axis=0))  # token_type_embeds = 0

    blocks = params['blocks']
    L = len(blocks)
    if L == 0:
        return run_ln_f(hidden, params['lnf_g'], params['lnf_b']), None

    # preallocated KV buffer; each layer writes its slice via aliasing
    presents_buf = jnp.zeros((L, 2, B, S, E), PRESENT_DTYPE)
    for li, blk in enumerate(blocks):
        lnf = (params['lnf_g'], params['lnf_b']) if li == L - 1 else None
        hidden, presents_buf = run_block(hidden, presents_buf, li, blk,
                                         n_head, lnf=lnf)

    if convert_present_layout:
        H = n_head
        Dh = E // H
        # single stage-boundary conversion to the reference (L,2,B,H,S,Dh)
        presents = presents_buf.reshape(L, 2, B, S, H, Dh).transpose(0, 1, 2, 4, 3, 5)
    else:
        presents = presents_buf
    return hidden, presents


if __name__ == "__main__":
    # small GPT-2-like config
    n_layer, n_embd, n_head = 2, 32, 4
    vocab, n_positions = 50, 64
    batch, seq = 2, 8

    key = jax.random.PRNGKey(0)
    pkey, ikey = jax.random.split(key)
    params = prepare_params(
        init_params(pkey, n_layer, n_embd, n_head, vocab, n_positions))
    input_ids = jax.random.randint(ikey, (batch, seq), 0, vocab, dtype=jnp.int32)

    fwd = jax.jit(lambda p, ids: gpt2_stage_forward(p, ids, n_head))
    hidden, presents = fwd(params, input_ids)
    jax.block_until_ready((hidden, presents))

    assert hidden.shape == (batch, seq, n_embd)
    assert presents.shape == (n_layer, 2, batch, n_head, seq, n_embd // n_head)
    print("KERNEL_OK")
</pallas_src>

<mosaic_0001>
module attributes {stable_mosaic.version = 11 : i64} {
  func.func @_block_kernel(%arg0: i32, %arg1: memref<1x8x32xf32, #tpu.memory_space<vmem>>, %arg2: memref<2x2x2x8x32xbf16, #tpu.memory_space<any>>, %arg3: memref<1x32xf32, #tpu.memory_space<vmem>>, %arg4: memref<1x32xf32, #tpu.memory_space<vmem>>, %arg5: memref<32x96xbf16, #tpu.memory_space<vmem>>, %arg6: memref<1x96xf32, #tpu.memory_space<vmem>>, %arg7: memref<32x32xbf16, #tpu.memory_space<vmem>>, %arg8: memref<1x32xf32, #tpu.memory_space<vmem>>, %arg9: memref<1x32xf32, #tpu.memory_space<vmem>>, %arg10: memref<1x32xf32, #tpu.memory_space<vmem>>, %arg11: memref<32x128xbf16, #tpu.memory_space<vmem>>, %arg12: memref<1x128xf32, #tpu.memory_space<vmem>>, %arg13: memref<128x32xbf16, #tpu.memory_space<vmem>>, %arg14: memref<1x32xf32, #tpu.memory_space<vmem>>, %arg15: memref<1x8x32xf32, #tpu.memory_space<vmem>>, %arg16: memref<1x2x1x8x32xbf16, #tpu.memory_space<vmem>>) attributes {dimension_semantics = [#tpu.dimension_semantics<parallel>], iteration_bounds = array<i64: 2>, scalar_prefetch = 0 : i64, scratch_operands = 0 : i64, tpu.core_type = #tpu.core_type<tc>, window_params = [{transform_indices = @transform_0, window_bounds = array<i64: 1, 8, 32>}, {}, {pipeline_mode = #tpu.pipeline_mode<synchronous>, transform_indices = @transform_2, window_bounds = array<i64: 1, 32>}, {pipeline_mode = #tpu.pipeline_mode<synchronous>, transform_indices = @transform_3, window_bounds = array<i64: 1, 32>}, {pipeline_mode = #tpu.pipeline_mode<synchronous>, transform_indices = @transform_4, window_bounds = array<i64: 32, 96>}, {pipeline_mode = #tpu.pipeline_mode<synchronous>, transform_indices = @transform_5, window_bounds = array<i64: 1, 96>}, {pipeline_mode = #tpu.pipeline_mode<synchronous>, transform_indices = @transform_6, window_bounds = array<i64: 32, 32>}, {pipeline_mode = #tpu.pipeline_mode<synchronous>, transform_indices = @transform_7, window_bounds = array<i64: 1, 32>}, {pipeline_mode = #tpu.pipeline_mode<synchronous>, transform_indices = @transform_8, window_bounds = array<i64: 1, 32>}, {pipeline_mode = #tpu.pipeline_mode<synchronous>, transform_indices = @transform_9, window_bounds = array<i64: 1, 32>}, {pipeline_mode = #tpu.pipeline_mode<synchronous>, transform_indices = @transform_10, window_bounds = array<i64: 32, 128>}, {pipeline_mode = #tpu.pipeline_mode<synchronous>, transform_indices = @transform_11, window_bounds = array<i64: 1, 128>}, {pipeline_mode = #tpu.pipeline_mode<synchronous>, transform_indices = @transform_12, window_bounds = array<i64: 128, 32>}, {pipeline_mode = #tpu.pipeline_mode<synchronous>, transform_indices = @transform_13, window_bounds = array<i64: 1, 32>}, {transform_indices = @transform_14, window_bounds = array<i64: 1, 8, 32>}, {transform_indices = @transform_15, window_bounds = array<i64: 1, 2, 1, 8, 32>}]} {
    %c0 = arith.constant 0 : index
    %c0_0 = arith.constant 0 : index
    %c0_1 = arith.constant 0 : index
    %0 = vector.load %arg1[%c0, %c0_0, %c0_1] : memref<1x8x32xf32, #tpu.memory_space<vmem>>, vector<1x8x32xf32>
    %1 = vector.shape_cast %0 : vector<1x8x32xf32> to vector<8x32xf32>
    %c0_2 = arith.constant 0 : index
    %c0_3 = arith.constant 0 : index
    %2 = vector.load %arg3[%c0_2, %c0_3] : memref<1x32xf32, #tpu.memory_space<vmem>>, vector<1x32xf32>
    %3 = vector.shape_cast %2 : vector<1x32xf32> to vector<32xf32>
    %c0_4 = arith.constant 0 : index
    %c0_5 = arith.constant 0 : index
    %4 = vector.load %arg4[%c0_4, %c0_5] : memref<1x32xf32, #tpu.memory_space<vmem>>, vector<1x32xf32>
    %5 = vector.shape_cast %4 : vector<1x32xf32> to vector<32xf32>
    %cst = arith.constant dense<0.000000e+00> : vector<8xf32>
    %6 = vector.multi_reduction <add>, %1, %cst [1] : vector<8x32xf32> to vector<8xf32>
    %7 = vector.shape_cast %6 : vector<8xf32> to vector<8x1xf32>
    %cst_6 = arith.constant 3.200000e+01 : f32
    %8 = vector.broadcast %cst_6 : f32 to vector<8x1xf32>
    %9 = arith.divf %7, %8 : vector<8x1xf32>
    %10 = vector.broadcast %9 : vector<8x1xf32> to vector<8x32xf32>
    %11 = arith.subf %1, %10 : vector<8x32xf32>
    %12 = arith.mulf %11, %11 : vector<8x32xf32>
    %cst_7 = arith.constant dense<0.000000e+00> : vector<8xf32>
    %13 = vector.multi_reduction <add>, %12, %cst_7 [1] : vector<8x32xf32> to vector<8xf32>
    %14 = vector.shape_cast %13 : vector<8xf32> to vector<8x1xf32>
    %cst_8 = arith.constant 3.200000e+01 : f32
    %15 = vector.broadcast %cst_8 : f32 to vector<8x1xf32>
    %16 = arith.divf %14, %15 : vector<8x1xf32>
    %cst_9 = arith.constant 9.99999974E-6 : f32
    %17 = vector.broadcast %cst_9 : f32 to vector<8x1xf32>
    %18 = arith.addf %16, %17 : vector<8x1xf32>
    %19 = math.rsqrt %18 : vector<8x1xf32>
    %20 = vector.broadcast %19 : vector<8x1xf32> to vector<8x32xf32>
    %21 = arith.mulf %11, %20 : vector<8x32xf32>
    %22 = vector.shape_cast %3 : vector<32xf32> to vector<1x32xf32>
    %23 = vector.broadcast %22 : vector<1x32xf32> to vector<8x32xf32>
    %24 = arith.mulf %21, %23 : vector<8x32xf32>
    %25 = vector.shape_cast %5 : vector<32xf32> to vector<1x32xf32>
    %26 = vector.broadcast %25 : vector<1x32xf32> to vector<8x32xf32>
    %27 = arith.addf %24, %26 : vector<8x32xf32>
    %28 = arith.truncf %27 : vector<8x32xf32> to vector<8x32xbf16>
    %c0_10 = arith.constant 0 : index
    %c0_11 = arith.constant 0 : index
    %29 = vector.load %arg5[%c0_10, %c0_11] : memref<32x96xbf16, #tpu.memory_space<vmem>>, vector<32x96xbf16>
    %cst_12 = arith.constant dense<0.000000e+00> : vector<8x96xf32>
    %30 = tpu.matmul %28, %29, %cst_12 {dimension_numbers = #tpu.dot_dimension_numbers<[1], [0], [0], [1], [0, 0, 1, 1], [], []>} : vector<8x32xbf16>, vector<32x96xbf16>, vector<8x96xf32> -> vector<8x96xf32>
    %c0_13 = arith.constant 0 : index
    %c0_14 = arith.constant 0 : index
    %31 = vector.load %arg6[%c0_13, %c0_14] : memref<1x96xf32, #tpu.memory_space<vmem>>, vector<1x96xf32>
    %32 = vector.shape_cast %31 : vector<1x96xf32> to vector<96xf32>
    %33 = vector.shape_cast %32 : vector<96xf32> to vector<1x96xf32>
    %34 = vector.broadcast %33 : vector<1x96xf32> to vector<8x96xf32>
    %35 = arith.addf %30, %34 : vector<8x96xf32>
    %36 = vector.extract_strided_slice %35 {offsets = [0, 32], sizes = [8, 32], strides = [1, 1]} : vector<8x96xf32> to vector<8x32xf32>
    %37 = vector.extract_strided_slice %35 {offsets = [0, 64], sizes = [8, 32], strides = [1, 1]} : vector<8x96xf32> to vector<8x32xf32>
    %38 = arith.truncf %36 : vector<8x32xf32> to vector<8x32xbf16>
    %c0_15 = arith.constant 0 : index
    %c0_16 = arith.constant 0 : index
    %c0_17 = arith.constant 0 : index
    %c0_18 = arith.constant 0 : index
    %c0_19 = arith.constant 0 : index
    %39 = vector.load %arg16[%c0_15, %c0_16, %c0_17, %c0_18, %c0_19] : memref<1x2x1x8x32xbf16, #tpu.memory_space<vmem>>, vector<1x1x1x8x32xbf16>
    %40 = vector.shape_cast %39 : vector<1x1x1x8x32xbf16> to vector<8x32xbf16>
    %41 = vector.shape_cast %38 : vector<8x32xbf16> to vector<1x1x1x8x32xbf16>
    tpu.vector_store %arg16[%c0_15, %c0_16, %c0_17, %c0_18, %c0_19], %41 {strides = array<i32>} : memref<1x2x1x8x32xbf16, #tpu.memory_space<vmem>>, vector<1x1x1x8x32xbf16>,
    %42 = arith.truncf %37 : vector<8x32xf32> to vector<8x32xbf16>
    %c0_20 = arith.constant 0 : index
    %c1 = arith.constant 1 : index
    %c0_21 = arith.constant 0 : index
    %c0_22 = arith.constant 0 : index
    %c0_23 = arith.constant 0 : index
    %43 = vector.load %arg16[%c0_20, %c1, %c0_21, %c0_22, %c0_23] : memref<1x2x1x8x32xbf16, #tpu.memory_space<vmem>>, vector<1x1x1x8x32xbf16>
    %44 = vector.shape_cast %43 : vector<1x1x1x8x32xbf16> to vector<8x32xbf16>
    %45 = vector.shape_cast %42 : vector<8x32xbf16> to vector<1x1x1x8x32xbf16>
    tpu.vector_store %arg16[%c0_20, %c1, %c0_21, %c0_22, %c0_23], %45 {strides = array<i32>} : memref<1x2x1x8x32xbf16, #tpu.memory_space<vmem>>, vector<1x1x1x8x32xbf16>,
    %46 = vector.extract_strided_slice %35 {offsets = [0, 0], sizes = [8, 32], strides = [1, 1]} : vector<8x96xf32> to vector<8x32xf32>
    %cst_24 = arith.constant 0.353553385 : f32
    %47 = vector.broadcast %cst_24 : f32 to vector<8x32xf32>
    %48 = arith.mulf %46, %47 : vector<8x32xf32>
    %49 = tpu.iota {dimensions = array<i32: 0>} : vector<8x8xi32>
    %50 = tpu.iota {dimensions = array<i32: 1>} : vector<8x8xi32>
    %51 = arith.cmpi sle, %50, %49 : vector<8x8xi32>
    %52 = vector.shape_cast %48 : vector<8x32xf32> to vector<8x4x8xf32>
    %53 = tpu.transpose %52, [1, 0, 2] : vector<8x4x8xf32> -> vector<4x8x8xf32>
    %54 = arith.truncf %53 : vector<4x8x8xf32> to vector<4x8x8xbf16>
    %55 = vector.shape_cast %36 : vector<8x32xf32> to vector<8x4x8xf32>
    %56 = tpu.transpose %55, [1, 0, 2] : vector<8x4x8xf32> -> vector<4x8x8xf32>
    %57 = arith.truncf %56 : vector<4x8x8xf32> to vector<4x8x8xbf16>
    %58 = vector.shape_cast %37 : vector<8x32xf32> to vector<8x4x8xf32>
    %59 = tpu.transpose %58, [1, 0, 2] : vector<8x4x8xf32> -> vector<4x8x8xf32>
    %60 = arith.truncf %59 : vector<4x8x8xf32> to vector<4x8x8xbf16>
    "tpu.trace_start"() <{level = 10 : i32, message = "hqd,hkd->hqk"}> : () -> ()
    %cst_25 = arith.constant dense<0.000000e+00> : vector<4x8x8xf32>
    %61 = tpu.matmul %54, %57, %cst_25 {dimension_numbers = #tpu.dot_dimension_numbers<[2], [2], [1], [1], [0, 0, 0, 1, 1, 1], [0], [0]>} : vector<4x8x8xbf16>, vector<4x8x8xbf16>, vector<4x8x8xf32> -> vector<4x8x8xf32>
    "tpu.trace_stop"() : () -> ()
    %62 = vector.shape_cast %51 : vector<8x8xi1> to vector<1x8x8xi1>
    %cst_26 = arith.constant -1.000000e+10 : f32
    %63 = vector.shape_cast %62 : vector<1x8x8xi1> to vector<1x8x8xi1>
    %64 = vector.broadcast %63 : vector<1x8x8xi1> to vector<4x8x8xi1>
    %65 = vector.broadcast %cst_26 : f32 to vector<4x8x8xf32>
    %66 = arith.select %64, %61, %65 : vector<4x8x8xi1>, vector<4x8x8xf32>
    %cst_27 = arith.constant dense<0xFF800000> : vector<4x8xf32>
    %67 = vector.multi_reduction <maximumf>, %66, %cst_27 [2] : vector<4x8x8xf32> to vector<4x8xf32>
    %68 = vector.shape_cast %67 : vector<4x8xf32> to vector<4x8x1xf32>
    %69 = vector.broadcast %68 : vector<4x8x1xf32> to vector<4x8x8xf32>
    %70 = arith.subf %66, %69 : vector<4x8x8xf32>
    %71 = math.exp %70 : vector<4x8x8xf32>
    %cst_28 = arith.constant dense<0.000000e+00> : vector<4x8xf32>
    %72 = vector.multi_reduction <add>, %71, %cst_28 [2] : vector<4x8x8xf32> to vector<4x8xf32>
    %73 = vector.shape_cast %72 : vector<4x8xf32> to vector<4x8x1xf32>
    %74 = tpu.reciprocal %73 {approx = true} : vector<4x8x1xf32> -> vector<4x8x1xf32>
    %75 = vector.broadcast %74 : vector<4x8x1xf32> to vector<4x8x8xf32>
    %76 = arith.mulf %71, %75 : vector<4x8x8xf32>
    %77 = arith.truncf %76 : vector<4x8x8xf32> to vector<4x8x8xbf16>
    "tpu.trace_start"() <{level = 10 : i32, message = "hqk,hkd->hqd"}> : () -> ()
    %cst_29 = arith.constant dense<0.000000e+00> : vector<4x8x8xf32>
    %78 = tpu.matmul %77, %60, %cst_29 {dimension_numbers = #tpu.dot_dimension_numbers<[2], [1], [1], [2], [0, 0, 0, 1, 1, 2], [0], [0]>} : vector<4x8x8xbf16>, vector<4x8x8xbf16>, vector<4x8x8xf32> -> vector<4x8x8xf32>
    "tpu.trace_stop"() : () -> ()
    %79 = tpu.transpose %78, [1, 0, 2] : vector<4x8x8xf32> -> vector<8x4x8xf32>
    %80 = vector.shape_cast %79 : vector<8x4x8xf32> to vector<8x32xf32>
    %81 = arith.truncf %80 : vector<8x32xf32> to vector<8x32xbf16>
    %c0_30 = arith.constant 0 : index
    %c0_31 = arith.constant 0 : index
    %82 = vector.load %arg7[%c0_30, %c0_31] : memref<32x32xbf16, #tpu.memory_space<vmem>>, vector<32x32xbf16>
    %cst_32 = arith.constant dense<0.000000e+00> : vector<8x32xf32>
    %83 = tpu.matmul %81, %82, %cst_32 {dimension_numbers = #tpu.dot_dimension_numbers<[1], [0], [0], [1], [0, 0, 1, 1], [], []>} : vector<8x32xbf16>, vector<32x32xbf16>, vector<8x32xf32> -> vector<8x32xf32>
    %c0_33 = arith.constant 0 : index
    %c0_34 = arith.constant 0 : index
    %84 = vector.load %arg8[%c0_33, %c0_34] : memref<1x32xf32, #tpu.memory_space<vmem>>, vector<1x32xf32>
    %85 = vector.shape_cast %84 : vector<1x32xf32> to vector<32xf32>
    %86 = vector.shape_cast %85 : vector<32xf32> to vector<1x32xf32>
    %87 = vector.broadcast %86 : vector<1x32xf32> to vector<8x32xf32>
    %88 = arith.addf %83, %87 : vector<8x32xf32>
    %89 = arith.addf %1, %88 : vector<8x32xf32>
    %c0_35 = arith.constant 0 : index
    %c0_36 = arith.constant 0 : index
    %90 = vector.load %arg9[%c0_35, %c0_36] : memref<1x32xf32, #tpu.memory_space<vmem>>, vector<1x32xf32>
    %91 = vector.shape_cast %90 : vector<1x32xf32> to vector<32xf32>
    %c0_37 = arith.constant 0 : index
    %c0_38 = arith.constant 0 : index
    %92 = vector.load %arg10[%c0_37, %c0_38] : memref<1x32xf32, #tpu.memory_space<vmem>>, vector<1x32xf32>
    %93 = vector.shape_cast %92 : vector<1x32xf32> to vector<32xf32>
    %cst_39 = arith.constant dense<0.000000e+00> : vector<8xf32>
    %94 = vector.multi_reduction <add>, %89, %cst_39 [1] : vector<8x32xf32> to vector<8xf32>
    %95 = vector.shape_cast %94 : vector<8xf32> to vector<8x1xf32>
    %cst_40 = arith.constant 3.200000e+01 : f32
    %96 = vector.broadcast %cst_40 : f32 to vector<8x1xf32>
    %97 = arith.divf %95, %96 : vector<8x1xf32>
    %98 = vector.broadcast %97 : vector<8x1xf32> to vector<8x32xf32>
    %99 = arith.subf %89, %98 : vector<8x32xf32>
    %100 = arith.mulf %99, %99 : vector<8x32xf32>
    %cst_41 = arith.constant dense<0.000000e+00> : vector<8xf32>
    %101 = vector.multi_reduction <add>, %100, %cst_41 [1] : vector<8x32xf32> to vector<8xf32>
    %102 = vector.shape_cast %101 : vector<8xf32> to vector<8x1xf32>
    %cst_42 = arith.constant 3.200000e+01 : f32
    %103 = vector.broadcast %cst_42 : f32 to vector<8x1xf32>
    %104 = arith.divf %102, %103 : vector<8x1xf32>
    %cst_43 = arith.constant 9.99999974E-6 : f32
    %105 = vector.broadcast %cst_43 : f32 to vector<8x1xf32>
    %106 = arith.addf %104, %105 : vector<8x1xf32>
    %107 = math.rsqrt %106 : vector<8x1xf32>
    %108 = vector.broadcast %107 : vector<8x1xf32> to vector<8x32xf32>
    %109 = arith.mulf %99, %108 : vector<8x32xf32>
    %110 = vector.shape_cast %91 : vector<32xf32> to vector<1x32xf32>
    %111 = vector.broadcast %110 : vector<1x32xf32> to vector<8x32xf32>
    %112 = arith.mulf %109, %111 : vector<8x32xf32>
    %113 = vector.shape_cast %93 : vector<32xf32> to vector<1x32xf32>
    %114 = vector.broadcast %113 : vector<1x32xf32> to vector<8x32xf32>
    %115 = arith.addf %112, %114 : vector<8x32xf32>
    %116 = arith.truncf %115 : vector<8x32xf32> to vector<8x32xbf16>
    %c0_44 = arith.constant 0 : index
    %c0_45 = arith.constant 0 : index
    %117 = vector.load %arg11[%c0_44, %c0_45] : memref<32x128xbf16, #tpu.memory_space<vmem>>, vector<32x128xbf16>
    %cst_46 = arith.constant dense<0.000000e+00> : vector<8x128xf32>
    %118 = tpu.matmul %116, %117, %cst_46 {dimension_numbers = #tpu.dot_dimension_numbers<[1], [0], [0], [1], [0, 0, 1, 1], [], []>} : vector<8x32xbf16>, vector<32x128xbf16>, vector<8x128xf32> -> vector<8x128xf32>
    %c0_47 = arith.constant 0 : index
    %c0_48 = arith.constant 0 : index
    %119 = vector.load %arg12[%c0_47, %c0_48] : memref<1x128xf32, #tpu.memory_space<vmem>>, vector<1x128xf32>
    %120 = vector.shape_cast %119 : vector<1x128xf32> to vector<128xf32>
    %121 = vector.shape_cast %120 : vector<128xf32> to vector<1x128xf32>
    %122 = vector.broadcast %121 : vector<1x128xf32> to vector<8x128xf32>
    %123 = arith.addf %118, %122 : vector<8x128xf32>
    %cst_49 = arith.constant 5.000000e-01 : f32
    %124 = vector.broadcast %cst_49 : f32 to vector<8x128xf32>
    %125 = arith.mulf %124, %123 : vector<8x128xf32>
    %126 = arith.mulf %123, %123 : vector<8x128xf32>
    %127 = arith.mulf %123, %126 : vector<8x128xf32>
    %cst_50 = arith.constant 4.471500e-02 : f32
    %128 = vector.broadcast %cst_50 : f32 to vector<8x128xf32>
    %129 = arith.mulf %128, %127 : vector<8x128xf32>
    %130 = arith.addf %123, %129 : vector<8x128xf32>
    %cst_51 = arith.constant 0.797884583 : f32
    %131 = vector.broadcast %cst_51 : f32 to vector<8x128xf32>
    %132 = arith.mulf %131, %130 : vector<8x128xf32>
    %133 = math.tanh %132 : vector<8x128xf32>
    %cst_52 = arith.constant 1.000000e+00 : f32
    %134 = vector.broadcast %cst_52 : f32 to vector<8x128xf32>
    %135 = arith.addf %134, %133 : vector<8x128xf32>
    %136 = arith.mulf %125, %135 : vector<8x128xf32>
    %137 = arith.truncf %136 : vector<8x128xf32> to vector<8x128xbf16>
    %c0_53 = arith.constant 0 : index
    %c0_54 = arith.constant 0 : index
    %138 = vector.load %arg13[%c0_53, %c0_54] : memref<128x32xbf16, #tpu.memory_space<vmem>>, vector<128x32xbf16>
    %cst_55 = arith.constant dense<0.000000e+00> : vector<8x32xf32>
    %139 = tpu.matmul %137, %138, %cst_55 {dimension_numbers = #tpu.dot_dimension_numbers<[1], [0], [0], [1], [0, 0, 1, 1], [], []>} : vector<8x128xbf16>, vector<128x32xbf16>, vector<8x32xf32> -> vector<8x32xf32>
    %c0_56 = arith.constant 0 : index
    %c0_57 = arith.constant 0 : index
    %140 = vector.load %arg14[%c0_56, %c0_57] : memref<1x32xf32, #tpu.memory_space<vmem>>, vector<1x32xf32>
    %141 = vector.shape_cast %140 : vector<1x32xf32> to vector<32xf32>
    %142 = vector.shape_cast %141 : vector<32xf32> to vector<1x32xf32>
    %143 = vector.broadcast %142 : vector<1x32xf32> to vector<8x32xf32>
    %144 = arith.addf %139, %143 : vector<8x32xf32>
    %145 = arith.addf %89, %144 : vector<8x32xf32>
    %c0_58 = arith.constant 0 : index
    %c0_59 = arith.constant 0 : index
    %c0_60 = arith.constant 0 : index
    %146 = vector.load %arg15[%c0_58, %c0_59, %c0_60] : memref<1x8x32xf32, #tpu.memory_space<vmem>>, vector<1x8x32xf32>
    %147 = vector.shape_cast %146 : vector<1x8x32xf32> to vector<8x32xf32>
    %148 = vector.shape_cast %145 : vector<8x32xf32> to vector<1x8x32xf32>
    tpu.vector_store %arg15[%c0_58, %c0_59, %c0_60], %148 {strides = array<i32>} : memref<1x8x32xf32, #tpu.memory_space<vmem>>, vector<1x8x32xf32>,
    return
  }
  func.func @transform_0(%arg0: i32) -> (i32, i32, i32) {
    %c0_i32 = arith.constant 0 : i32
    %c0_i32_0 = arith.constant 0 : i32
    %c0_i32_1 = arith.constant 0 : i32
    return %arg0, %c0_i32, %c0_i32_0 : i32, i32, i32
  }
  func.func @transform_2(%arg0: i32) -> (i32, i32) {
    %c0_i32 = arith.constant 0 : i32
    %c0_i32_0 = arith.constant 0 : i32
    %c0_i32_1 = arith.constant 0 : i32
    return %c0_i32, %c0_i32_0 : i32, i32
  }
  func.func @transform_3(%arg0: i32) -> (i32, i32) {
    %c0_i32 = arith.constant 0 : i32
    %c0_i32_0 = arith.constant 0 : i32
    %c0_i32_1 = arith.constant 0 : i32
    return %c0_i32, %c0_i32_0 : i32, i32
  }
  func.func @transform_4(%arg0: i32) -> (i32, i32) {
    %c0_i32 = arith.constant 0 : i32
    %c0_i32_0 = arith.constant 0 : i32
    %c0_i32_1 = arith.constant 0 : i32
    return %c0_i32, %c0_i32_0 : i32, i32
  }
  func.func @transform_5(%arg0: i32) -> (i32, i32) {
    %c0_i32 = arith.constant 0 : i32
    %c0_i32_0 = arith.constant 0 : i32
    %c0_i32_1 = arith.constant 0 : i32
    return %c0_i32, %c0_i32_0 : i32, i32
  }
  func.func @transform_6(%arg0: i32) -> (i32, i32) {
    %c0_i32 = arith.constant 0 : i32
    %c0_i32_0 = arith.constant 0 : i32
    %c0_i32_1 = arith.constant 0 : i32
    return %c0_i32, %c0_i32_0 : i32, i32
  }
  func.func @transform_7(%arg0: i32) -> (i32, i32) {
    %c0_i32 = arith.constant 0 : i32
    %c0_i32_0 = arith.constant 0 : i32
    %c0_i32_1 = arith.constant 0 : i32
    return %c0_i32, %c0_i32_0 : i32, i32
  }
  func.func @transform_8(%arg0: i32) -> (i32, i32) {
    %c0_i32 = arith.constant 0 : i32
    %c0_i32_0 = arith.constant 0 : i32
    %c0_i32_1 = arith.constant 0 : i32
    return %c0_i32, %c0_i32_0 : i32, i32
  }
  func.func @transform_9(%arg0: i32) -> (i32, i32) {
    %c0_i32 = arith.constant 0 : i32
    %c0_i32_0 = arith.constant 0 : i32
    %c0_i32_1 = arith.constant 0 : i32
    return %c0_i32, %c0_i32_0 : i32, i32
  }
  func.func @transform_10(%arg0: i32) -> (i32, i32) {
    %c0_i32 = arith.constant 0 : i32
    %c0_i32_0 = arith.constant 0 : i32
    %c0_i32_1 = arith.constant 0 : i32
    return %c0_i32, %c0_i32_0 : i32, i32
  }
  func.func @transform_11(%arg0: i32) -> (i32, i32) {
    %c0_i32 = arith.constant 0 : i32
    %c0_i32_0 = arith.constant 0 : i32
    %c0_i32_1 = arith.constant 0 : i32
    return %c0_i32, %c0_i32_0 : i32, i32
  }
  func.func @transform_12(%arg0: i32) -> (i32, i32) {
    %c0_i32 = arith.constant 0 : i32
    %c0_i32_0 = arith.constant 0 : i32
    %c0_i32_1 = arith.constant 0 : i32
    return %c0_i32, %c0_i32_0 : i32, i32
  }
  func.func @transform_13(%arg0: i32) -> (i32, i32) {
    %c0_i32 = arith.constant 0 : i32
    %c0_i32_0 = arith.constant 0 : i32
    %c0_i32_1 = arith.constant 0 : i32
    return %c0_i32, %c0_i32_0 : i32, i32
  }
  func.func @transform_14(%arg0: i32) -> (i32, i32, i32) {
    %c0_i32 = arith.constant 0 : i32
    %c0_i32_0 = arith.constant 0 : i32
    %c0_i32_1 = arith.constant 0 : i32
    return %arg0, %c0_i32, %c0_i32_0 : i32, i32, i32
  }
  func.func @transform_15(%arg0: i32) -> (i32, i32, i32, i32, i32) {
    %c0_i32 = arith.constant 0 : i32
    %c0_i32_0 = arith.constant 0 : i32
    %c0_i32_1 = arith.constant 0 : i32
    %c0_i32_2 = arith.constant 0 : i32
    %c0_i32_3 = arith.constant 0 : i32
    return %c0_i32, %c0_i32_0, %arg0, %c0_i32_1, %c0_i32_2 : i32, i32, i32, i32, i32
  }
}

module attributes {stable_mosaic.version = 11 : i64} {
  func.func @_block_kernel(%arg0: i32, %arg1: memref<1x8x32xf32, #tpu.memory_space<vmem>>, %arg2: memref<2x2x2x8x32xbf16, #tpu.memory_space<any>>, %arg3: memref<1x32xf32, #tpu.memory_space<vmem>>, %arg4: memref<1x32xf32, #tpu.memory_space<vmem>>, %arg5: memref<32x96xbf16, #tpu.memory_space<vmem>>, %arg6: memref<1x96xf32, #tpu.memory_space<vmem>>, %arg7: memref<32x32xbf16, #tpu.memory_space<vmem>>, %arg8: memref<1x32xf32, #tpu.memory_space<vmem>>, %arg9: memref<1x32xf32, #tpu.memory_space<vmem>>, %arg10: memref<1x32xf32, #tpu.memory_space<vmem>>, %arg11: memref<32x128xbf16, #tpu.memory_space<vmem>>, %arg12: memref<1x128xf32, #tpu.memory_space<vmem>>, %arg13: memref<128x32xbf16, #tpu.memory_space<vmem>>, %arg14: memref<1x32xf32, #tpu.memory_space<vmem>>, %arg15: memref<1x32xf32, #tpu.memory_space<vmem>>, %arg16: memref<1x32xf32, #tpu.memory_space<vmem>>, %arg17: memref<1x8x32xf32, #tpu.memory_space<vmem>>, %arg18: memref<1x2x1x8x32xbf16, #tpu.memory_space<vmem>>) attributes {dimension_semantics = [#tpu.dimension_semantics<parallel>], iteration_bounds = array<i64: 2>, scalar_prefetch = 0 : i64, scratch_operands = 0 : i64, tpu.core_type = #tpu.core_type<tc>, window_params = [{transform_indices = @transform_0, window_bounds = array<i64: 1, 8, 32>}, {}, {pipeline_mode = #tpu.pipeline_mode<synchronous>, transform_indices = @transform_2, window_bounds = array<i64: 1, 32>}, {pipeline_mode = #tpu.pipeline_mode<synchronous>, transform_indices = @transform_3, window_bounds = array<i64: 1, 32>}, {pipeline_mode = #tpu.pipeline_mode<synchronous>, transform_indices = @transform_4, window_bounds = array<i64: 32, 96>}, {pipeline_mode = #tpu.pipeline_mode<synchronous>, transform_indices = @transform_5, window_bounds = array<i64: 1, 96>}, {pipeline_mode = #tpu.pipeline_mode<synchronous>, transform_indices = @transform_6, window_bounds = array<i64: 32, 32>}, {pipeline_mode = #tpu.pipeline_mode<synchronous>, transform_indices = @transform_7, window_bounds = array<i64: 1, 32>}, {pipeline_mode = #tpu.pipeline_mode<synchronous>, transform_indices = @transform_8, window_bounds = array<i64: 1, 32>}, {pipeline_mode = #tpu.pipeline_mode<synchronous>, transform_indices = @transform_9, window_bounds = array<i64: 1, 32>}, {pipeline_mode = #tpu.pipeline_mode<synchronous>, transform_indices = @transform_10, window_bounds = array<i64: 32, 128>}, {pipeline_mode = #tpu.pipeline_mode<synchronous>, transform_indices = @transform_11, window_bounds = array<i64: 1, 128>}, {pipeline_mode = #tpu.pipeline_mode<synchronous>, transform_indices = @transform_12, window_bounds = array<i64: 128, 32>}, {pipeline_mode = #tpu.pipeline_mode<synchronous>, transform_indices = @transform_13, window_bounds = array<i64: 1, 32>}, {pipeline_mode = #tpu.pipeline_mode<synchronous>, transform_indices = @transform_14, window_bounds = array<i64: 1, 32>}, {pipeline_mode = #tpu.pipeline_mode<synchronous>, transform_indices = @transform_15, window_bounds = array<i64: 1, 32>}, {transform_indices = @transform_16, window_bounds = array<i64: 1, 8, 32>}, {transform_indices = @transform_17, window_bounds = array<i64: 1, 2, 1, 8, 32>}]} {
    %c0 = arith.constant 0 : index
    %c0_0 = arith.constant 0 : index
    %c0_1 = arith.constant 0 : index
    %0 = vector.load %arg1[%c0, %c0_0, %c0_1] : memref<1x8x32xf32, #tpu.memory_space<vmem>>, vector<1x8x32xf32>
    %1 = vector.shape_cast %0 : vector<1x8x32xf32> to vector<8x32xf32>
    %c0_2 = arith.constant 0 : index
    %c0_3 = arith.constant 0 : index
    %2 = vector.load %arg3[%c0_2, %c0_3] : memref<1x32xf32, #tpu.memory_space<vmem>>, vector<1x32xf32>
    %3 = vector.shape_cast %2 : vector<1x32xf32> to vector<32xf32>
    %c0_4 = arith.constant 0 : index
    %c0_5 = arith.constant 0 : index
    %4 = vector.load %arg4[%c0_4, %c0_5] : memref<1x32xf32, #tpu.memory_space<vmem>>, vector<1x32xf32>
    %5 = vector.shape_cast %4 : vector<1x32xf32> to vector<32xf32>
    %cst = arith.constant dense<0.000000e+00> : vector<8xf32>
    %6 = vector.multi_reduction <add>, %1, %cst [1] : vector<8x32xf32> to vector<8xf32>
    %7 = vector.shape_cast %6 : vector<8xf32> to vector<8x1xf32>
    %cst_6 = arith.constant 3.200000e+01 : f32
    %8 = vector.broadcast %cst_6 : f32 to vector<8x1xf32>
    %9 = arith.divf %7, %8 : vector<8x1xf32>
    %10 = vector.broadcast %9 : vector<8x1xf32> to vector<8x32xf32>
    %11 = arith.subf %1, %10 : vector<8x32xf32>
    %12 = arith.mulf %11, %11 : vector<8x32xf32>
    %cst_7 = arith.constant dense<0.000000e+00> : vector<8xf32>
    %13 = vector.multi_reduction <add>, %12, %cst_7 [1] : vector<8x32xf32> to vector<8xf32>
    %14 = vector.shape_cast %13 : vector<8xf32> to vector<8x1xf32>
    %cst_8 = arith.constant 3.200000e+01 : f32
    %15 = vector.broadcast %cst_8 : f32 to vector<8x1xf32>
    %16 = arith.divf %14, %15 : vector<8x1xf32>
    %cst_9 = arith.constant 9.99999974E-6 : f32
    %17 = vector.broadcast %cst_9 : f32 to vector<8x1xf32>
    %18 = arith.addf %16, %17 : vector<8x1xf32>
    %19 = math.rsqrt %18 : vector<8x1xf32>
    %20 = vector.broadcast %19 : vector<8x1xf32> to vector<8x32xf32>
    %21 = arith.mulf %11, %20 : vector<8x32xf32>
    %22 = vector.shape_cast %3 : vector<32xf32> to vector<1x32xf32>
    %23 = vector.broadcast %22 : vector<1x32xf32> to vector<8x32xf32>
    %24 = arith.mulf %21, %23 : vector<8x32xf32>
    %25 = vector.shape_cast %5 : vector<32xf32> to vector<1x32xf32>
    %26 = vector.broadcast %25 : vector<1x32xf32> to vector<8x32xf32>
    %27 = arith.addf %24, %26 : vector<8x32xf32>
    %28 = arith.truncf %27 : vector<8x32xf32> to vector<8x32xbf16>
    %c0_10 = arith.constant 0 : index
    %c0_11 = arith.constant 0 : index
    %29 = vector.load %arg5[%c0_10, %c0_11] : memref<32x96xbf16, #tpu.memory_space<vmem>>, vector<32x96xbf16>
    %cst_12 = arith.constant dense<0.000000e+00> : vector<8x96xf32>
    %30 = tpu.matmul %28, %29, %cst_12 {dimension_numbers = #tpu.dot_dimension_numbers<[1], [0], [0], [1], [0, 0, 1, 1], [], []>} : vector<8x32xbf16>, vector<32x96xbf16>, vector<8x96xf32> -> vector<8x96xf32>
    %c0_13 = arith.constant 0 : index
    %c0_14 = arith.constant 0 : index
    %31 = vector.load %arg6[%c0_13, %c0_14] : memref<1x96xf32, #tpu.memory_space<vmem>>, vector<1x96xf32>
    %32 = vector.shape_cast %31 : vector<1x96xf32> to vector<96xf32>
    %33 = vector.shape_cast %32 : vector<96xf32> to vector<1x96xf32>
    %34 = vector.broadcast %33 : vector<1x96xf32> to vector<8x96xf32>
    %35 = arith.addf %30, %34 : vector<8x96xf32>
    %36 = vector.extract_strided_slice %35 {offsets = [0, 32], sizes = [8, 32], strides = [1, 1]} : vector<8x96xf32> to vector<8x32xf32>
    %37 = vector.extract_strided_slice %35 {offsets = [0, 64], sizes = [8, 32], strides = [1, 1]} : vector<8x96xf32> to vector<8x32xf32>
    %38 = arith.truncf %36 : vector<8x32xf32> to vector<8x32xbf16>
    %c0_15 = arith.constant 0 : index
    %c0_16 = arith.constant 0 : index
    %c0_17 = arith.constant 0 : index
    %c0_18 = arith.constant 0 : index
    %c0_19 = arith.constant 0 : index
    %39 = vector.load %arg18[%c0_15, %c0_16, %c0_17, %c0_18, %c0_19] : memref<1x2x1x8x32xbf16, #tpu.memory_space<vmem>>, vector<1x1x1x8x32xbf16>
    %40 = vector.shape_cast %39 : vector<1x1x1x8x32xbf16> to vector<8x32xbf16>
    %41 = vector.shape_cast %38 : vector<8x32xbf16> to vector<1x1x1x8x32xbf16>
    tpu.vector_store %arg18[%c0_15, %c0_16, %c0_17, %c0_18, %c0_19], %41 {strides = array<i32>} : memref<1x2x1x8x32xbf16, #tpu.memory_space<vmem>>, vector<1x1x1x8x32xbf16>,
    %42 = arith.truncf %37 : vector<8x32xf32> to vector<8x32xbf16>
    %c0_20 = arith.constant 0 : index
    %c1 = arith.constant 1 : index
    %c0_21 = arith.constant 0 : index
    %c0_22 = arith.constant 0 : index
    %c0_23 = arith.constant 0 : index
    %43 = vector.load %arg18[%c0_20, %c1, %c0_21, %c0_22, %c0_23] : memref<1x2x1x8x32xbf16, #tpu.memory_space<vmem>>, vector<1x1x1x8x32xbf16>
    %44 = vector.shape_cast %43 : vector<1x1x1x8x32xbf16> to vector<8x32xbf16>
    %45 = vector.shape_cast %42 : vector<8x32xbf16> to vector<1x1x1x8x32xbf16>
    tpu.vector_store %arg18[%c0_20, %c1, %c0_21, %c0_22, %c0_23], %45 {strides = array<i32>} : memref<1x2x1x8x32xbf16, #tpu.memory_space<vmem>>, vector<1x1x1x8x32xbf16>,
    %46 = vector.extract_strided_slice %35 {offsets = [0, 0], sizes = [8, 32], strides = [1, 1]} : vector<8x96xf32> to vector<8x32xf32>
    %cst_24 = arith.constant 0.353553385 : f32
    %47 = vector.broadcast %cst_24 : f32 to vector<8x32xf32>
    %48 = arith.mulf %46, %47 : vector<8x32xf32>
    %49 = tpu.iota {dimensions = array<i32: 0>} : vector<8x8xi32>
    %50 = tpu.iota {dimensions = array<i32: 1>} : vector<8x8xi32>
    %51 = arith.cmpi sle, %50, %49 : vector<8x8xi32>
    %52 = vector.shape_cast %48 : vector<8x32xf32> to vector<8x4x8xf32>
    %53 = tpu.transpose %52, [1, 0, 2] : vector<8x4x8xf32> -> vector<4x8x8xf32>
    %54 = arith.truncf %53 : vector<4x8x8xf32> to vector<4x8x8xbf16>
    %55 = vector.shape_cast %36 : vector<8x32xf32> to vector<8x4x8xf32>
    %56 = tpu.transpose %55, [1, 0, 2] : vector<8x4x8xf32> -> vector<4x8x8xf32>
    %57 = arith.truncf %56 : vector<4x8x8xf32> to vector<4x8x8xbf16>
    %58 = vector.shape_cast %37 : vector<8x32xf32> to vector<8x4x8xf32>
    %59 = tpu.transpose %58, [1, 0, 2] : vector<8x4x8xf32> -> vector<4x8x8xf32>
    %60 = arith.truncf %59 : vector<4x8x8xf32> to vector<4x8x8xbf16>
    "tpu.trace_start"() <{level = 10 : i32, message = "hqd,hkd->hqk"}> : () -> ()
    %cst_25 = arith.constant dense<0.000000e+00> : vector<4x8x8xf32>
    %61 = tpu.matmul %54, %57, %cst_25 {dimension_numbers = #tpu.dot_dimension_numbers<[2], [2], [1], [1], [0, 0, 0, 1, 1, 1], [0], [0]>} : vector<4x8x8xbf16>, vector<4x8x8xbf16>, vector<4x8x8xf32> -> vector<4x8x8xf32>
    "tpu.trace_stop"() : () -> ()
    %62 = vector.shape_cast %51 : vector<8x8xi1> to vector<1x8x8xi1>
    %cst_26 = arith.constant -1.000000e+10 : f32
    %63 = vector.shape_cast %62 : vector<1x8x8xi1> to vector<1x8x8xi1>
    %64 = vector.broadcast %63 : vector<1x8x8xi1> to vector<4x8x8xi1>
    %65 = vector.broadcast %cst_26 : f32 to vector<4x8x8xf32>
    %66 = arith.select %64, %61, %65 : vector<4x8x8xi1>, vector<4x8x8xf32>
    %cst_27 = arith.constant dense<0xFF800000> : vector<4x8xf32>
    %67 = vector.multi_reduction <maximumf>, %66, %cst_27 [2] : vector<4x8x8xf32> to vector<4x8xf32>
    %68 = vector.shape_cast %67 : vector<4x8xf32> to vector<4x8x1xf32>
    %69 = vector.broadcast %68 : vector<4x8x1xf32> to vector<4x8x8xf32>
    %70 = arith.subf %66, %69 : vector<4x8x8xf32>
    %71 = math.exp %70 : vector<4x8x8xf32>
    %cst_28 = arith.constant dense<0.000000e+00> : vector<4x8xf32>
    %72 = vector.multi_reduction <add>, %71, %cst_28 [2] : vector<4x8x8xf32> to vector<4x8xf32>
    %73 = vector.shape_cast %72 : vector<4x8xf32> to vector<4x8x1xf32>
    %74 = tpu.reciprocal %73 {approx = true} : vector<4x8x1xf32> -> vector<4x8x1xf32>
    %75 = vector.broadcast %74 : vector<4x8x1xf32> to vector<4x8x8xf32>
    %76 = arith.mulf %71, %75 : vector<4x8x8xf32>
    %77 = arith.truncf %76 : vector<4x8x8xf32> to vector<4x8x8xbf16>
    "tpu.trace_start"() <{level = 10 : i32, message = "hqk,hkd->hqd"}> : () -> ()
    %cst_29 = arith.constant dense<0.000000e+00> : vector<4x8x8xf32>
    %78 = tpu.matmul %77, %60, %cst_29 {dimension_numbers = #tpu.dot_dimension_numbers<[2], [1], [1], [2], [0, 0, 0, 1, 1, 2], [0], [0]>} : vector<4x8x8xbf16>, vector<4x8x8xbf16>, vector<4x8x8xf32> -> vector<4x8x8xf32>
    "tpu.trace_stop"() : () -> ()
    %79 = tpu.transpose %78, [1, 0, 2] : vector<4x8x8xf32> -> vector<8x4x8xf32>
    %80 = vector.shape_cast %79 : vector<8x4x8xf32> to vector<8x32xf32>
    %81 = arith.truncf %80 : vector<8x32xf32> to vector<8x32xbf16>
    %c0_30 = arith.constant 0 : index
    %c0_31 = arith.constant 0 : index
    %82 = vector.load %arg7[%c0_30, %c0_31] : memref<32x32xbf16, #tpu.memory_space<vmem>>, vector<32x32xbf16>
    %cst_32 = arith.constant dense<0.000000e+00> : vector<8x32xf32>
    %83 = tpu.matmul %81, %82, %cst_32 {dimension_numbers = #tpu.dot_dimension_numbers<[1], [0], [0], [1], [0, 0, 1, 1], [], []>} : vector<8x32xbf16>, vector<32x32xbf16>, vector<8x32xf32> -> vector<8x32xf32>
    %c0_33 = arith.constant 0 : index
    %c0_34 = arith.constant 0 : index
    %84 = vector.load %arg8[%c0_33, %c0_34] : memref<1x32xf32, #tpu.memory_space<vmem>>, vector<1x32xf32>
    %85 = vector.shape_cast %84 : vector<1x32xf32> to vector<32xf32>
    %86 = vector.shape_cast %85 : vector<32xf32> to vector<1x32xf32>
    %87 = vector.broadcast %86 : vector<1x32xf32> to vector<8x32xf32>
    %88 = arith.addf %83, %87 : vector<8x32xf32>
    %89 = arith.addf %1, %88 : vector<8x32xf32>
    %c0_35 = arith.constant 0 : index
    %c0_36 = arith.constant 0 : index
    %90 = vector.load %arg9[%c0_35, %c0_36] : memref<1x32xf32, #tpu.memory_space<vmem>>, vector<1x32xf32>
    %91 = vector.shape_cast %90 : vector<1x32xf32> to vector<32xf32>
    %c0_37 = arith.constant 0 : index
    %c0_38 = arith.constant 0 : index
    %92 = vector.load %arg10[%c0_37, %c0_38] : memref<1x32xf32, #tpu.memory_space<vmem>>, vector<1x32xf32>
    %93 = vector.shape_cast %92 : vector<1x32xf32> to vector<32xf32>
    %cst_39 = arith.constant dense<0.000000e+00> : vector<8xf32>
    %94 = vector.multi_reduction <add>, %89, %cst_39 [1] : vector<8x32xf32> to vector<8xf32>
    %95 = vector.shape_cast %94 : vector<8xf32> to vector<8x1xf32>
    %cst_40 = arith.constant 3.200000e+01 : f32
    %96 = vector.broadcast %cst_40 : f32 to vector<8x1xf32>
    %97 = arith.divf %95, %96 : vector<8x1xf32>
    %98 = vector.broadcast %97 : vector<8x1xf32> to vector<8x32xf32>
    %99 = arith.subf %89, %98 : vector<8x32xf32>
    %100 = arith.mulf %99, %99 : vector<8x32xf32>
    %cst_41 = arith.constant dense<0.000000e+00> : vector<8xf32>
    %101 = vector.multi_reduction <add>, %100, %cst_41 [1] : vector<8x32xf32> to vector<8xf32>
    %102 = vector.shape_cast %101 : vector<8xf32> to vector<8x1xf32>
    %cst_42 = arith.constant 3.200000e+01 : f32
    %103 = vector.broadcast %cst_42 : f32 to vector<8x1xf32>
    %104 = arith.divf %102, %103 : vector<8x1xf32>
    %cst_43 = arith.constant 9.99999974E-6 : f32
    %105 = vector.broadcast %cst_43 : f32 to vector<8x1xf32>
    %106 = arith.addf %104, %105 : vector<8x1xf32>
    %107 = math.rsqrt %106 : vector<8x1xf32>
    %108 = vector.broadcast %107 : vector<8x1xf32> to vector<8x32xf32>
    %109 = arith.mulf %99, %108 : vector<8x32xf32>
    %110 = vector.shape_cast %91 : vector<32xf32> to vector<1x32xf32>
    %111 = vector.broadcast %110 : vector<1x32xf32> to vector<8x32xf32>
    %112 = arith.mulf %109, %111 : vector<8x32xf32>
    %113 = vector.shape_cast %93 : vector<32xf32> to vector<1x32xf32>
    %114 = vector.broadcast %113 : vector<1x32xf32> to vector<8x32xf32>
    %115 = arith.addf %112, %114 : vector<8x32xf32>
    %116 = arith.truncf %115 : vector<8x32xf32> to vector<8x32xbf16>
    %c0_44 = arith.constant 0 : index
    %c0_45 = arith.constant 0 : index
    %117 = vector.load %arg11[%c0_44, %c0_45] : memref<32x128xbf16, #tpu.memory_space<vmem>>, vector<32x128xbf16>
    %cst_46 = arith.constant dense<0.000000e+00> : vector<8x128xf32>
    %118 = tpu.matmul %116, %117, %cst_46 {dimension_numbers = #tpu.dot_dimension_numbers<[1], [0], [0], [1], [0, 0, 1, 1], [], []>} : vector<8x32xbf16>, vector<32x128xbf16>, vector<8x128xf32> -> vector<8x128xf32>
    %c0_47 = arith.constant 0 : index
    %c0_48 = arith.constant 0 : index
    %119 = vector.load %arg12[%c0_47, %c0_48] : memref<1x128xf32, #tpu.memory_space<vmem>>, vector<1x128xf32>
    %120 = vector.shape_cast %119 : vector<1x128xf32> to vector<128xf32>
    %121 = vector.shape_cast %120 : vector<128xf32> to vector<1x128xf32>
    %122 = vector.broadcast %121 : vector<1x128xf32> to vector<8x128xf32>
    %123 = arith.addf %118, %122 : vector<8x128xf32>
    %cst_49 = arith.constant 5.000000e-01 : f32
    %124 = vector.broadcast %cst_49 : f32 to vector<8x128xf32>
    %125 = arith.mulf %124, %123 : vector<8x128xf32>
    %126 = arith.mulf %123, %123 : vector<8x128xf32>
    %127 = arith.mulf %123, %126 : vector<8x128xf32>
    %cst_50 = arith.constant 4.471500e-02 : f32
    %128 = vector.broadcast %cst_50 : f32 to vector<8x128xf32>
    %129 = arith.mulf %128, %127 : vector<8x128xf32>
    %130 = arith.addf %123, %129 : vector<8x128xf32>
    %cst_51 = arith.constant 0.797884583 : f32
    %131 = vector.broadcast %cst_51 : f32 to vector<8x128xf32>
    %132 = arith.mulf %131, %130 : vector<8x128xf32>
    %133 = math.tanh %132 : vector<8x128xf32>
    %cst_52 = arith.constant 1.000000e+00 : f32
    %134 = vector.broadcast %cst_52 : f32 to vector<8x128xf32>
    %135 = arith.addf %134, %133 : vector<8x128xf32>
    %136 = arith.mulf %125, %135 : vector<8x128xf32>
    %137 = arith.truncf %136 : vector<8x128xf32> to vector<8x128xbf16>
    %c0_53 = arith.constant 0 : index
    %c0_54 = arith.constant 0 : index
    %138 = vector.load %arg13[%c0_53, %c0_54] : memref<128x32xbf16, #tpu.memory_space<vmem>>, vector<128x32xbf16>
    %cst_55 = arith.constant dense<0.000000e+00> : vector<8x32xf32>
    %139 = tpu.matmul %137, %138, %cst_55 {dimension_numbers = #tpu.dot_dimension_numbers<[1], [0], [0], [1], [0, 0, 1, 1], [], []>} : vector<8x128xbf16>, vector<128x32xbf16>, vector<8x32xf32> -> vector<8x32xf32>
    %c0_56 = arith.constant 0 : index
    %c0_57 = arith.constant 0 : index
    %140 = vector.load %arg14[%c0_56, %c0_57] : memref<1x32xf32, #tpu.memory_space<vmem>>, vector<1x32xf32>
    %141 = vector.shape_cast %140 : vector<1x32xf32> to vector<32xf32>
    %142 = vector.shape_cast %141 : vector<32xf32> to vector<1x32xf32>
    %143 = vector.broadcast %142 : vector<1x32xf32> to vector<8x32xf32>
    %144 = arith.addf %139, %143 : vector<8x32xf32>
    %145 = arith.addf %89, %144 : vector<8x32xf32>
    %c0_58 = arith.constant 0 : index
    %c0_59 = arith.constant 0 : index
    %146 = vector.load %arg15[%c0_58, %c0_59] : memref<1x32xf32, #tpu.memory_space<vmem>>, vector<1x32xf32>
    %147 = vector.shape_cast %146 : vector<1x32xf32> to vector<32xf32>
    %c0_60 = arith.constant 0 : index
    %c0_61 = arith.constant 0 : index
    %148 = vector.load %arg16[%c0_60, %c0_61] : memref<1x32xf32, #tpu.memory_space<vmem>>, vector<1x32xf32>
    %149 = vector.shape_cast %148 : vector<1x32xf32> to vector<32xf32>
    %cst_62 = arith.constant dense<0.000000e+00> : vector<8xf32>
    %150 = vector.multi_reduction <add>, %145, %cst_62 [1] : vector<8x32xf32> to vector<8xf32>
    %151 = vector.shape_cast %150 : vector<8xf32> to vector<8x1xf32>
    %cst_63 = arith.constant 3.200000e+01 : f32
    %152 = vector.broadcast %cst_63 : f32 to vector<8x1xf32>
    %153 = arith.divf %151, %152 : vector<8x1xf32>
    %154 = vector.broadcast %153 : vector<8x1xf32> to vector<8x32xf32>
    %155 = arith.subf %145, %154 : vector<8x32xf32>
    %156 = arith.mulf %155, %155 : vector<8x32xf32>
    %cst_64 = arith.constant dense<0.000000e+00> : vector<8xf32>
    %157 = vector.multi_reduction <add>, %156, %cst_64 [1] : vector<8x32xf32> to vector<8xf32>
    %158 = vector.shape_cast %157 : vector<8xf32> to vector<8x1xf32>
    %cst_65 = arith.constant 3.200000e+01 : f32
    %159 = vector.broadcast %cst_65 : f32 to vector<8x1xf32>
    %160 = arith.divf %158, %159 : vector<8x1xf32>
    %cst_66 = arith.constant 9.99999974E-6 : f32
    %161 = vector.broadcast %cst_66 : f32 to vector<8x1xf32>
    %162 = arith.addf %160, %161 : vector<8x1xf32>
    %163 = math.rsqrt %162 : vector<8x1xf32>
    %164 = vector.broadcast %163 : vector<8x1xf32> to vector<8x32xf32>
    %165 = arith.mulf %155, %164 : vector<8x32xf32>
    %166 = vector.shape_cast %147 : vector<32xf32> to vector<1x32xf32>
    %167 = vector.broadcast %166 : vector<1x32xf32> to vector<8x32xf32>
    %168 = arith.mulf %165, %167 : vector<8x32xf32>
    %169 = vector.shape_cast %149 : vector<32xf32> to vector<1x32xf32>
    %170 = vector.broadcast %169 : vector<1x32xf32> to vector<8x32xf32>
    %171 = arith.addf %168, %170 : vector<8x32xf32>
    %c0_67 = arith.constant 0 : index
    %c0_68 = arith.constant 0 : index
    %c0_69 = arith.constant 0 : index
    %172 = vector.load %arg17[%c0_67, %c0_68, %c0_69] : memref<1x8x32xf32, #tpu.memory_space<vmem>>, vector<1x8x32xf32>
    %173 = vector.shape_cast %172 : vector<1x8x32xf32> to vector<8x32xf32>
    %174 = vector.shape_cast %171 : vector<8x32xf32> to vector<1x8x32xf32>
    tpu.vector_store %arg17[%c0_67, %c0_68, %c0_69], %174 {strides = array<i32>} : memref<1x8x32xf32, #tpu.memory_space<vmem>>, vector<1x8x32xf32>,
    return
  }
  func.func @transform_0(%arg0: i32) -> (i32, i32, i32) {
    %c0_i32 = arith.constant 0 : i32
    %c0_i32_0 = arith.constant 0 : i32
    %c0_i32_1 = arith.constant 0 : i32
    return %arg0, %c0_i32, %c0_i32_0 : i32, i32, i32
  }
  func.func @transform_2(%arg0: i32) -> (i32, i32) {
    %c0_i32 = arith.constant 0 : i32
    %c0_i32_0 = arith.constant 0 : i32
    %c0_i32_1 = arith.constant 0 : i32
    return %c0_i32, %c0_i32_0 : i32, i32
  }
  func.func @transform_3(%arg0: i32) -> (i32, i32) {
    %c0_i32 = arith.constant 0 : i32
    %c0_i32_0 = arith.constant 0 : i32
    %c0_i32_1 = arith.constant 0 : i32
    return %c0_i32, %c0_i32_0 : i32, i32
  }
  func.func @transform_4(%arg0: i32) -> (i32, i32) {
    %c0_i32 = arith.constant 0 : i32
    %c0_i32_0 = arith.constant 0 : i32
    %c0_i32_1 = arith.constant 0 : i32
    return %c0_i32, %c0_i32_0 : i32, i32
  }
  func.func @transform_5(%arg0: i32) -> (i32, i32) {
    %c0_i32 = arith.constant 0 : i32
    %c0_i32_0 = arith.constant 0 : i32
    %c0_i32_1 = arith.constant 0 : i32
    return %c0_i32, %c0_i32_0 : i32, i32
  }
  func.func @transform_6(%arg0: i32) -> (i32, i32) {
    %c0_i32 = arith.constant 0 : i32
    %c0_i32_0 = arith.constant 0 : i32
    %c0_i32_1 = arith.constant 0 : i32
    return %c0_i32, %c0_i32_0 : i32, i32
  }
  func.func @transform_7(%arg0: i32) -> (i32, i32) {
    %c0_i32 = arith.constant 0 : i32
    %c0_i32_0 = arith.constant 0 : i32
    %c0_i32_1 = arith.constant 0 : i32
    return %c0_i32, %c0_i32_0 : i32, i32
  }
  func.func @transform_8(%arg0: i32) -> (i32, i32) {
    %c0_i32 = arith.constant 0 : i32
    %c0_i32_0 = arith.constant 0 : i32
    %c0_i32_1 = arith.constant 0 : i32
    return %c0_i32, %c0_i32_0 : i32, i32
  }
  func.func @transform_9(%arg0: i32) -> (i32, i32) {
    %c0_i32 = arith.constant 0 : i32
    %c0_i32_0 = arith.constant 0 : i32
    %c0_i32_1 = arith.constant 0 : i32
    return %c0_i32, %c0_i32_0 : i32, i32
  }
  func.func @transform_10(%arg0: i32) -> (i32, i32) {
    %c0_i32 = arith.constant 0 : i32
    %c0_i32_0 = arith.constant 0 : i32
    %c0_i32_1 = arith.constant 0 : i32
    return %c0_i32, %c0_i32_0 : i32, i32
  }
  func.func @transform_11(%arg0: i32) -> (i32, i32) {
    %c0_i32 = arith.constant 0 : i32
    %c0_i32_0 = arith.constant 0 : i32
    %c0_i32_1 = arith.constant 0 : i32
    return %c0_i32, %c0_i32_0 : i32, i32
  }
  func.func @transform_12(%arg0: i32) -> (i32, i32) {
    %c0_i32 = arith.constant 0 : i32
    %c0_i32_0 = arith.constant 0 : i32
    %c0_i32_1 = arith.constant 0 : i32
    return %c0_i32, %c0_i32_0 : i32, i32
  }
  func.func @transform_13(%arg0: i32) -> (i32, i32) {
    %c0_i32 = arith.constant 0 : i32
    %c0_i32_0 = arith.constant 0 : i32
    %c0_i32_1 = arith.constant 0 : i32
    return %c0_i32, %c0_i32_0 : i32, i32
  }
  func.func @transform_14(%arg0: i32) -> (i32, i32) {
    %c0_i32 = arith.constant 0 : i32
    %c0_i32_0 = arith.constant 0 : i32
    %c0_i32_1 = arith.constant 0 : i32
    return %c0_i32, %c0_i32_0 : i32, i32
  }
  func.func @transform_15(%arg0: i32) -> (i32, i32) {
    %c0_i32 = arith.constant 0 : i32
    %c0_i32_0 = arith.constant 0 : i32
    %c0_i32_1 = arith.constant 0 : i32
    return %c0_i32, %c0_i32_0 : i32, i32
  }
  func.func @transform_16(%arg0: i32) -> (i32, i32, i32) {
    %c0_i32 = arith.constant 0 : i32
    %c0_i32_0 = arith.constant 0 : i32
    %c0_i32_1 = arith.constant 0 : i32
    return %arg0, %c0_i32, %c0_i32_0 : i32, i32, i32
  }
  func.func @transform_17(%arg0: i32) -> (i32, i32, i32, i32, i32) {
    %c1_i32 = arith.constant 1 : i32
    %c0_i32 = arith.constant 0 : i32
    %c0_i32_0 = arith.constant 0 : i32
    %c0_i32_1 = arith.constant 0 : i32
    %c0_i32_2 = arith.constant 0 : i32
    return %c1_i32, %c0_i32, %arg0, %c0_i32_0, %c0_i32_1 : i32, i32, i32, i32, i32
  }
}

</mosaic_0001>

<bundles_post_ra>
// kernel: _lambda_.3
= control target key start
LH: loop header
LB: loop body
LE: loop exit
PB: predicated region body
PF: predicated region fallthrough
CT: control target
= control target key end

     0   :  { %s3016_s0 = inlined_call_operand.vmem [shape: f32[2,8,32], index: 0, kind: input, shape index: {}]   ;;  %s3017_s1 = inlined_call_operand.vmem [shape: bf16[2,2,2,8,32], index: 1, kind: input, shape index: {}, may-alias: {1,17}]   ;;  %s3018_s2 = inlined_call_operand.vmem [shape: f32[1,32], index: 2, kind: input, shape index: {}]   ;;  %s3019_s3 = inlined_call_operand.vmem [shape: f32[1,32], index: 3, kind: input, shape index: {}]   ;;  %s3020_s4 = inlined_call_operand.vmem [shape: bf16[32,96], index: 4, kind: input, shape index: {}]   ;;  %s3021_s5 = inlined_call_operand.vmem [shape: f32[1,96], index: 5, kind: input, shape index: {}]   ;;  %s3022_s6 = inlined_call_operand.vmem [shape: bf16[32,32], index: 6, kind: input, shape index: {}]   ;;  %s3023_s7 = inlined_call_operand.vmem [shape: f32[1,32], index: 7, kind: input, shape index: {}]   ;;  %s3024_s8 = inlined_call_operand.vmem [shape: f32[1,32], index: 8, kind: input, shape index: {}]   ;;  %s3025_s9 = inlined_call_operand.vmem [shape: f32[1,32], index: 9, kind: input, shape index: {}]   ;;  %s3026_s10 = inlined_call_operand.vmem [shape: bf16[32,128], index: 10, kind: input, shape index: {}]   ;;  %s3027_s11 = inlined_call_operand.vmem [shape: f32[1,128], index: 11, kind: input, shape index: {}]   ;;  %s3028_s12 = inlined_call_operand.vmem [shape: bf16[128,32], index: 12, kind: input, shape index: {}]   ;;  %s3029_s13 = inlined_call_operand.vmem [shape: f32[1,32], index: 13, kind: input, shape index: {}]   ;;  %s3030_s14 = inlined_call_operand.vmem [shape: f32[1,32], index: 14, kind: input, shape index: {}]   ;;  %s3031_s15 = inlined_call_operand.vmem [shape: f32[1,32], index: 15, kind: input, shape index: {}]   ;;  %s3032_s16 = inlined_call_operand.hbm [shape: f32[2,8,32], index: 16, kind: output, shape index: {0}]   ;;  %s3033_s17 = inlined_call_operand.vmem [shape: bf16[2,2,2,8,32], index: 17, kind: output, shape index: {1}, may-alias: {1,17}]  }
   0x1   :  { %3036 = sst [smem:[#allocation7_spill]] %s3016_s0 }
   0x2   :  { %3037 = sst [smem:[#allocation8_spill]] %s3018_s2 }
   0x3   :  { %3038 = sst [smem:[#allocation9_spill]] %s3019_s3 }
   0x4   :  { %3039 = sst [smem:[#allocation10_spill]] %s3020_s4 }
   0x5   :  { %3040 = sst [smem:[#allocation11_spill]] %s3021_s5 }
   0x6   :  { %3041 = sst [smem:[#allocation12_spill]] %s3022_s6 }
   0x7   :  { %3042 = sst [smem:[#allocation13_spill]] %s3023_s7 }
   0x8   :  { %3043 = sst [smem:[#allocation14_spill]] %s3024_s8 }
   0x9   :  { %23 = vsyncpa [#allocation3], 0 }
   0xa   :  { %25 = vsyncpa [#allocation3 + $0x1], 0  ;;  %s2597_s24 = smov 0   ;;  %s2599_s25 = smov 0  }
   0xb   :  { %s2601_s26 = smov 0   ;;  %s2603_s27 = smov 0  }
   0xc LB: > { %s2618_s28 = sadd.s32 4294967295, %s2492_s27   ;;  %s2156_s29 = sadd.s32 4294967294, %s2492_s27   ;;  %s2492_s27 = sphi %s2603_s27, %s3061_s27   ;;  %s2488_s26 = sphi %s2601_s26, %s3060_s26   ;;  %s2484_s25 = sphi %s2599_s25, %s3059_s25   ;;  %s2480_s24 = sphi %s2597_s24, %s3058_s24  }
   0xd   : > { %s2622_s0 = sadd.s32 1, %s2492_s27   ;;  %s358_s30 = sadd.s32 1, %s2488_s26 }
   0xe   : > { %s355_s18 = ssub.s32 %s2492_s27, %s2622_s0  ;;  %p368_p0 = scmp.ne.s32.totalorder %s2488_s26, %s2484_s25 }
   0xf   : > { %p356_p1 = scmp.eq.s32.totalorder %s355_s18, 0  ;;  %p369_p2 = scmp.eq.s32.totalorder %s2618_s28, 1 }
  0x10   : > { %p374_p3 = scmp.ne.s32.totalorder %s2484_s25, %s2480_s24  ;;  %p375_p4 = scmp.eq.s32.totalorder %s2156_s29, 1 }
  0x11   : > { %s2633_s19 = scalar_select %p356_p1, %s2488_s26, %s358_s30  }
  0x12   : > { %p2635_p5 = por %p369_p2, %p368_p0  ;;  %p2639_p6 = por %p375_p4, %p374_p3 }
  0x13   : > { %3044 = sst [smem:[#allocation6_spill]] %s2633_s19  ;;  %p2159_p7 = scmp.ge.s32.totalorder %s2492_s27, 1 }
  0x14   : > { %p468_p8 = scmp.lt.s32.totalorder %s2492_s27, 3 }
  0x16   : > { %p469_p9 = pnand %p2159_p7, %p468_p8 }
  0x17   : > { %p521_p10 = scmp.lt.s32.totalorder (!%p469_p9), %s2618_s28, 1  ;;  %s3047_s30 = sld [smem:[#allocation7_spill]] (!%p469_p9) }
  0x18   : > { %472 = sbr.rel (%p469_p9) target bundleno = 2963 (0xb93), region = 80  ;;  %s3048_s4 = sld [smem:[#allocation10_spill]] (!%p469_p9) }
  0x19   : > { %s3049_s2 = sld [smem:[#allocation8_spill]] (!%p469_p9)  ;;  %s2496_s23 = smov (!%p469_p9), 104  }
  0x1a   : > { %s3050_s3 = sld [smem:[#allocation9_spill]] (!%p469_p9)  ;;  %s2497_s19 = smov (!%p469_p9), 120  }
  0x1b   : > { %s3051_s5 = sld [smem:[#allocation11_spill]] (!%p469_p9)  ;;  %s2498_s29 = smov (!%p469_p9), 112  }
  0x1c   : > { %s3052_s6 = sld [smem:[#allocation12_spill]] (!%p469_p9) }
  0x1d   : > { %s522_s21 = scalar_select %p521_p10, %s2618_s28, 1  ;;  %vm529_vm0 = vcmask 261120   ;;  %v2494_v8 = vmov 0.0   ;;  %vm2495_vm1 = vmmov 0   ;;  %v640_v30 = vlaneseq }
  0x1e   : > { %v2394_v7 = vld [vmem:[%s3048_s4 + $0x8] sm:$0xff]   ;;  %2251 = vmatprep.subr.bf16.mxu0 %v2494_v8  ;;  %2255 = vmatprep.mubr.msk.bf16.mxu0 %vm2495_vm1, %v2494_v8  ;;  %v2395_v9 = vld [vmem:[%s3048_s4] sm:$0xff]   ;;  %v2500_v34 = vmov 1983009808   ;;  %v2501_v37 = vmov 1934713408  }
  0x1f   : > { %s2162_s22 = sshll.u32 %s522_s21, 3  ;;  %2252 = vmatpush3.bf16.msra.mxu0 %v2394_v7  ;;  %2271 = vmatprep.subr.bf16.mxu1 %v2494_v8  ;;  %v2163_v14 = vld [vmem:[%s3049_s2] ss:$0 sm:$0xff]  ;;  %v2707_v31 = vshrl.u32 %v640_v30, 7  ;;  %v2709_v32 = vand.u32 127, %v640_v30  ;;  %v658_v35 = vunpack.c.l.s4 %v2500_v34  ;;  %v690_v38 = vunpack.c.l.s4 %v2501_v37  ;;  %s2504_s21 = smov 8  }
  0x20   : > { %s524_s18 = scalar_lea.vmem %s3047_s30, %s2162_s22  ;;  %2253 = vmatprep.subr.bf16.mxu0 %v2494_v8  ;;  %2273 = vmatprep.mubr.msk.bf16.mxu1 %vm2495_vm1, %v2494_v8  ;;  %v2164_v16 = vld [vmem:[%s3050_s3] ss:$0 sm:$0xff]  ;;  %s2499_s30 = smov 96   ;;  %vm1106_vm3 = vcmask 64512   ;;  %vm1348_vm4 = vcmask 1043456   ;;  %vm1679_vm5 = vcmask 130048  }
  0x21   : > { %v2650_v0 = vld [vmem:[%s524_s18] sm:$0xff]  ;;  %vm644_vm2 = vcmp.le.s32.totalorder %v2709_v32, %v2707_v31  ;;  %v659_v39 = vunpack.c.0.s8 %v658_v35  ;;  %v691_v41 = vunpack.c.0.s8 %v690_v38  ;;  %s3034_s18 = smov 64   ;;  %s2505_s22 = smov 24   ;;  %vm1681_vm6 = vcmask 195584  }
  0x22   : > { %v530_v1 = vsel %vm529_vm0, %v2650_v0, 0.0  ;;  %v2165_v20 = vld [vmem:[%s3051_s5] ss:$0 sm:$0xff]  ;;  %s3053_s7 = sld [smem:[#allocation13_spill]]  ;;  %vm632_vm7 = vcmask 257024   ;;  %s2506_s4 = smov [#allocation2]  }
  0x23   : > { %531 = vadd.xlane.f32.xlu0 %v530_v1  ;;  %2254 = vmatpush3.bf16.msra.mxu0 %v2395_v9  ;;  %v2714_v42 = vsub.s32 %v659_v39, %v2707_v31  ;;  %v2717_v48 = vsub.s32 %v691_v41, %v2707_v31  ;;  %s3054_s8 = sld [smem:[#allocation14_spill]]  ;;  %s2436_s2 = sshll.u32 %s2506_s4, 4  ;;  %s2437_s2 = int_to_ptr.vmem [resolvable:$false] %s2436_s2 }
  0x24   : > { %2259 = vmatprep.subr.bf16.mxu0 %v2494_v8 }
  0xac   : > { %v532_v2 = vpop.xlane.xlu0 %531 }
  0xad   : > { %v534_v3 = vmul.f32 0.03125, %v532_v2 }
  0xaf   : > { %v535_v4 = vsub.f32 %v2650_v0, %v534_v3 }
  0xb1   : > { %v536_v5 = vmul.f32 %v535_v4, %v535_v4 }
  0xb3   : > { %v537_v6 = vsel %vm529_vm0, %v536_v5, 0.0 }
  0xb4   : > { %538 = vadd.xlane.f32.xlu0 %v537_v6 }
 0x13d   : > { %v539_v10 = vpop.xlane.xlu0 %538 }
 0x13e   : > { %v540_v11 = vmul.f32 0.03125, %v539_v10 }
 0x140   : > { %v541_v12 = vadd.f32 1e-05, %v540_v11 }
 0x142   : > { %2408 = vrsqrt.f32 %v541_v12 }
 0x14f   : > { %v2409_v13 = vpop.eup %2408 }
 0x150   : > { %v543_v15 = vmul.f32 %v2409_v13, %v535_v4 }
 0x152   : > { %v550_v17 = vmul.f32 %v2163_v14, %v543_v15 }
 0x154   : > { %v557_v18 = vadd.f32 %v2164_v16, %v550_v17 }
 0x156   : > { %v558_v19 = vpack.c.bf16 %v557_v18, %v557_v18 }
 0x158   : > { %2256 = vmatmul.mubr.msk.bf16.vlgmr.msra.gmra.mxu0 %vm529_vm0, %v558_v19 }
 0x159   : > { %2261 = vmatprep.mubr.msk.bf16.mxu0 %vm2495_vm1, %v2494_v8 }
 0x218   : > { %v619_v21 = vpop.f32.mrf.mxu0 }
 0x219   : > { %v2682_v22 = vadd.f32 %v2165_v20, %v619_v21 }
 0x21a   : > { %v2257_v23 = vpop.f32.mrf.mxu0 }
 0x21b   : > { %800 = vrot.lane.b32.xlu0 %v2682_v22, %s2496_s23  ;;  %796 = vrot.lane.b32.xlu1 %v2682_v22, %s2497_s19  ;;  %v2687_v25 = vmul.f32 0.35355338, %v2682_v22 }
 0x21c   : > { %v622_v24 = vpop.f32.mrf.mxu0 }
 0x21e   : > { %v2258_v26 = vpop.f32.mrf.mxu0 }
 0x21f   : > { %798 = vrot.lane.b32.xlu1 %v2682_v22, %s2498_s29  ;;  %652 = vrot.lane.b32.xlu0 %v2687_v25, %s2496_s23 }
 0x223   : > { %802 = vrot.lane.b32.xlu1 %v2682_v22, %s2499_s30 }
 0x28d   : > { %v2693_v27 = vpop.permute.xlu1 %796  ;;  %v2701_v29 = vpop.permute.xlu0 %800 }
 0x28e   : > { %804 = vrot.lane.b32.xlu1 %v2693_v27, %s2499_s30 }
 0x291   : > { %v2697_v28 = vpop.permute.xlu1 %798  ;;  %v653_v58 = vpop.permute.xlu0 %652 }
 0x292   : > { %806 = vrot.lane.b32.xlu1 %v2697_v28, %s2499_s30 }
 0x295   : > { %v803_v33 = vpop.permute.xlu1 %802 }
 0x296   : > { %808 = vrot.lane.b32.xlu1 %v2701_v29, %s2499_s30 }
 0x29a   : > { %646 = vrot.lane.b32.xlu1 %v2687_v25, %s2497_s19  ;;  %s3035_s19 = sand.u32 1, %s2484_s25  }
 0x29e   : > { %649 = vrot.lane.b32.xlu1 %v2687_v25, %s2498_s29  ;;  %s2503_s29 = smov 16  }
 0x300   : > { %v805_v36 = vpop.permute.xlu1 %804 }
 0x304   : > { %v807_v40 = vpop.permute.xlu1 %806 }
 0x305   : > { %v814_v43 = vcombine.low %v803_v33, %v807_v40  ;;  %v815_v44 = vcombine.high %v803_v33, %v807_v40 }
 0x307   : > { %v822_v49 = vrot.slane %v814_v43, %v2714_v42  ;;  %v829_v50 = vrot.slane %v815_v44, %v2714_v42 }
 0x308   : > { %v809_v45 = vpop.permute.xlu1 %808 }
 0x309   : > { %v830_v46 = vcombine.low %v805_v36, %v809_v45  ;;  %v831_v47 = vcombine.high %v805_v36, %v809_v45 }
 0x30b   : > { %v838_v51 = vrot.slane %v830_v46, %v2714_v42  ;;  %v845_v52 = vrot.slane %v831_v47, %v2714_v42 }
 0x30c   : > { %v647_v53 = vpop.permute.xlu1 %646 }
 0x30d   : > { %v846_v54 = vcombine.low %v822_v49, %v838_v51  ;;  %v847_v55 = vcombine.high %v822_v49, %v838_v51  ;;  %v862_v56 = vcombine.low %v829_v50, %v845_v52  ;;  %v863_v57 = vcombine.high %v829_v50, %v845_v52 }
 0x30e   : > { %v671_v63 = vcombine.low %v647_v53, %v653_v58  ;;  %v672_v1 = vcombine.high %v647_v53, %v653_v58 }
 0x30f   : > { %v854_v59 = vrot.slane %v846_v54, %v2717_v48  ;;  %v861_v60 = vrot.slane %v847_v55, %v2717_v48  ;;  %v870_v61 = vrot.slane %v862_v56, %v2717_v48  ;;  %v877_v62 = vrot.slane %v863_v57, %v2717_v48 }
 0x310   : > { %v650_v2 = vpop.permute.xlu1 %649  ;;  %v679_v14 = vrot.slane %v671_v63, %v2714_v42  ;;  %v686_v15 = vrot.slane %v672_v1, %v2714_v42 }
 0x311   : > { %v882_v3 = vcombine.low %v854_v59, %v861_v60  ;;  %v2173_v4 = vcombine.high %v854_v59, %v861_v60  ;;  %v898_v5 = vcombine.low %v870_v61, %v877_v62  ;;  %v2174_v6 = vcombine.high %v870_v61, %v877_v62 }
 0x312   : > { %v655_v7 = vcombine.low %v2687_v25, %v650_v2  ;;  %v656_v9 = vcombine.high %v2687_v25, %v650_v2 }
 0x313   : > { %v889_v10 = vrot.slane %v882_v3, %v2714_v42  ;;  %v897_v11 = vrot.slane %v2173_v4, %v2714_v42  ;;  %v905_v12 = vrot.slane %v898_v5, %v2714_v42  ;;  %v913_v13 = vrot.slane %v2174_v6, %v2714_v42 }
 0x314   : > { %v663_v16 = vrot.slane %v655_v7, %v2714_v42  ;;  %v670_v17 = vrot.slane %v656_v9, %v2714_v42 }
 0x315   : > { %v914_v18 = vcombine.low %v889_v10, %v897_v11  ;;  %v930_v19 = vcombine.low %v905_v12, %v913_v13  ;;  %v915_v20 = vcombine.high %v889_v10, %v897_v11  ;;  %v931_v21 = vcombine.high %v905_v12, %v913_v13 }
 0x316   : > { %v687_v23 = vcombine.low %v663_v16, %v679_v14  ;;  %v688_v24 = vcombine.high %v663_v16, %v679_v14  ;;  %v703_v25 = vcombine.low %v670_v17, %v686_v15  ;;  %v704_v26 = vcombine.high %v670_v17, %v686_v15 }
 0x317   : > { %v922_v30 = vrot.slane %v914_v18, %v2717_v48  ;;  %v938_v33 = vrot.slane %v930_v19, %v2717_v48  ;;  %v929_v34 = vrot.slane %v915_v20, %v2717_v48  ;;  %v945_v35 = vrot.slane %v931_v21, %v2717_v48 }
 0x318   : > { %v695_v36 = vrot.slane %v687_v23, %v2717_v48  ;;  %v702_v37 = vrot.slane %v688_v24, %v2717_v48  ;;  %v711_v38 = vrot.slane %v703_v25, %v2717_v48  ;;  %v718_v39 = vrot.slane %v704_v26, %v2717_v48 }
 0x319   : > { %v946_v40 = vcombine.low %v922_v30, %v938_v33  ;;  %v948_v41 = vcombine.low %v929_v34, %v945_v35  ;;  %v947_v56 = vcombine.high %v922_v30, %v938_v33  ;;  %v949_v9 = vcombine.high %v929_v34, %v945_v35 }
 0x31a   : > { %v723_v43 = vcombine.low %v695_v36, %v702_v37  ;;  %v2171_v44 = vcombine.high %v695_v36, %v702_v37  ;;  %v739_v45 = vcombine.low %v711_v38, %v718_v39  ;;  %v2172_v46 = vcombine.high %v711_v38, %v718_v39 }
 0x31b   : > { %v950_v47 = vpack.c.bf16 %v946_v40, %v946_v40  ;;  %v952_v49 = vpack.c.bf16 %v948_v41, %v948_v41  ;;  %v951_v3 = vpack.c.bf16 %v947_v56, %v947_v56  ;;  %v953_v11 = vpack.c.bf16 %v949_v9, %v949_v9 }
 0x31c   : > { %v730_v50 = vrot.slane %v723_v43, %v2714_v42  ;;  %v738_v51 = vrot.slane %v2171_v44, %v2714_v42  ;;  %v746_v52 = vrot.slane %v739_v45, %v2714_v42  ;;  %v754_v53 = vrot.slane %v2172_v46, %v2714_v42 }
 0x31d   : > { %v1111_v54 = vsel %vm1106_vm3, %v950_v47, 0  ;;  %v1203_v55 = vsel %vm1106_vm3, %v952_v49, 0  ;;  %v1157_v7 = vsel %vm1106_vm3, %v951_v3, 0  ;;  %v1249_v13 = vsel %vm1106_vm3, %v953_v11, 0 }
 0x31e   : > { %v755_v57 = vcombine.low %v730_v50, %v738_v51  ;;  %v771_v58 = vcombine.low %v746_v52, %v754_v53  ;;  %2260 = vmatpush3.bf16.xpose.msra.mxu0 %v1111_v54  ;;  %2272 = vmatpush3.bf16.xpose.msra.mxu1 %v1203_v55  ;;  %v756_v59 = vcombine.high %v730_v50, %v738_v51 }
 0x31f   : > { %2265 = vmatprep.subr.bf16.mxu0 %v2494_v8  ;;  %v772_v60 = vcombine.high %v746_v52, %v754_v53  ;;  %2283 = vmatprep.subr.bf16.mxu1 %v2494_v8 }
 0x320   : > { %v763_v61 = vrot.slane %v755_v57, %v2717_v48  ;;  %v779_v62 = vrot.slane %v771_v58, %v2717_v48  ;;  %v770_v63 = vrot.slane %v756_v59, %v2717_v48 }
 0x321   : > { %v786_v1 = vrot.slane %v772_v60, %v2717_v48 }
 0x322   : > { %v787_v2 = vcombine.low %v763_v61, %v779_v62  ;;  %v788_v10 = vcombine.high %v763_v61, %v779_v62 }
 0x323   : > { %v789_v4 = vcombine.low %v770_v63, %v786_v1  ;;  %v790_v14 = vcombine.high %v770_v63, %v786_v1 }
 0x324   : > { %v791_v5 = vpack.c.bf16 %v787_v2, %v787_v2  ;;  %v792_v12 = vpack.c.bf16 %v788_v10, %v788_v10 }
 0x325   : > { %v793_v6 = vpack.c.bf16 %v789_v4, %v789_v4  ;;  %v794_v15 = vpack.c.bf16 %v790_v14, %v790_v14 }
 0x326   : > { %2262 = vmatmul.mubr.msk.bf16.vlgmr.msra.gmra.mxu0 %vm1106_vm3, %v791_v5 }
 0x327   : > { %2274 = vmatmul.mubr.msk.bf16.vlgmr.msra.gmra.mxu1 %vm1106_vm3, %v793_v6  ;;  %2266 = vmatpush3.bf16.xpose.msra.mxu0 %v1157_v7 }
 0x328   : > { %2267 = vmatprep.mubr.msk.bf16.mxu0 %vm2495_vm1, %v2494_v8  ;;  %2277 = vmatprep.subr.bf16.mxu0 %v2494_v8 }
 0x329   : > { %2285 = vmatprep.mubr.msk.bf16.mxu1 %vm2495_vm1, %v2494_v8 }
 0x32e   : > { %2268 = vmatmul.mubr.msk.bf16.vlgmr.msra.gmra.mxu0 %vm1106_vm3, %v792_v12 }
 0x32f   : > { %2278 = vmatpush3.bf16.xpose.msra.mxu0 %v1249_v13  ;;  %2279 = vmatprep.mubr.msk.bf16.mxu0 %vm2495_vm1, %v2494_v8 }
 0x330   : > { %2289 = vmatprep.subr.bf16.mxu0 %v2494_v8 }
 0x336   : > { %2280 = vmatmul.mubr.msk.bf16.vlgmr.msra.gmra.mxu0 %vm1106_vm3, %v794_v15 }
 0x337   : > { %2291 = vmatprep.mubr.msk.bf16.mxu0 %vm2495_vm1, %v2494_v8 }
 0x3e6   : > { %v1147_v16 = vpop.f32.mrf.mxu0 }
 0x3e7   : > { %v1293_v17 = vsel %vm644_vm2, %v1147_v16, -1e+10  ;;  %v1239_v18 = vpop.f32.mrf.mxu1 }
 0x3e8   : > { %v1295_v19 = vsel %vm644_vm2, %v1239_v18, -1e+10  ;;  %v2263_v20 = vpop.f32.mrf.mxu0  ;;  %v1297_v21 = vsel %vm1106_vm3, %v1293_v17, -inf }
 0x3e9   : > { %v2275_v23 = vpop.f32.mrf.mxu1  ;;  %v1303_v24 = vsel %vm1106_vm3, %v1295_v19, -inf  ;;  %1298 = vmax.xlane.f32.xlu1 %v1297_v21 }
 0x3ea   : > { %1304 = vmax.xlane.f32.xlu0 %v1303_v24  ;;  %v1150_v25 = vpop.f32.mrf.mxu0 }
 0x3eb   : > { %v1242_v26 = vpop.f32.mrf.mxu1 }
 0x3ec   : > { %v2264_v30 = vpop.f32.mrf.mxu0 }
 0x3ed   : > { %v2276_v33 = vpop.f32.mrf.mxu1 }
 0x3ee   : > { %v1193_v34 = vpop.f32.mrf.mxu0 }
 0x3ef   : > { %v1294_v35 = vsel %vm644_vm2, %v1193_v34, -1e+10 }
 0x3f0   : > { %v2269_v36 = vpop.f32.mrf.mxu0  ;;  %v1300_v37 = vsel %vm1106_vm3, %v1294_v35, -inf }
 0x3f1   : > { %1301 = vmax.xlane.f32.xlu0 %v1300_v37 }
 0x3f2   : > { %v1196_v38 = vpop.f32.mrf.mxu0 }
 0x3f4   : > { %v2270_v39 = vpop.f32.mrf.mxu0 }
 0x3f6   : > { %v1285_v40 = vpop.f32.mrf.mxu0 }
 0x3f7   : > { %v1296_v41 = vsel %vm644_vm2, %v1285_v40, -1e+10 }
 0x3f8   : > { %v2281_v43 = vpop.f32.mrf.mxu0  ;;  %v1306_v44 = vsel %vm1106_vm3, %v1296_v41, -inf }
 0x3f9   : > { %1307 = vmax.xlane.f32.xlu1 %v1306_v44 }
 0x3fa   : > { %v1288_v45 = vpop.f32.mrf.mxu0 }
 0x3fc   : > { %v2282_v46 = vpop.f32.mrf.mxu0 }
 0x407   : > { %954 = vrot.lane.b32.xlu0 %v2682_v22, %s3034_s18 }
 0x40a   : > { %956 = vrot.lane.b32.xlu1 %v2693_v27, %s3034_s18 }
 0x472   : > { %v1299_v47 = vpop.xlane.xlu1 %1298 }
 0x473   : > { %v1309_v49 = vsub.f32 %v1293_v17, %v1299_v47  ;;  %v1305_v51 = vpop.xlane.xlu0 %1304 }
 0x474   : > { %v1311_v59 = vsub.f32 %v1295_v19, %v1305_v51 }
 0x475   : > { %v1313_v50 = vmul.f32 1.442695, %v1309_v49 }
 0x476   : > { %v1317_v60 = vmul.f32 1.442695, %v1311_v59 }
 0x477   : > { %2410 = vpow2.f32 %v1313_v50 }
 0x47a   : > { %v1302_v31 = vpop.xlane.xlu0 %1301 }
 0x47b   : > { %v1310_v32 = vsub.f32 %v1294_v35, %v1302_v31 }
 0x47d   : > { %v1315_v52 = vmul.f32 1.442695, %v1310_v32 }
 0x47e   : > { %v955_v1 = vpop.permute.xlu0 %954 }
 0x47f   : > { %2412 = vpow2.f32 %v1315_v52 }
 0x482   : > { %v1308_v56 = vpop.xlane.xlu1 %1307 }
 0x483   : > { %v1312_v57 = vsub.f32 %v1296_v41, %v1308_v56 }
 0x484   : > { %v2793_v53 = vpop.eup %2410 }
 0x485   : > { %v1321_v54 = vsel %vm1106_vm3, %v2793_v53, 0.0  ;;  %v1319_v58 = vmul.f32 1.442695, %v1312_v57 }
 0x486   : > { %1322 = vadd.xlane.f32.xlu0 %v1321_v54  ;;  %v957_v2 = vpop.permute.xlu1 %956 }
 0x487   : > { %2414 = vpow2.f32 %v1319_v58 }
 0x488   : > { %2416 = vpow2.f32 %v1317_v60 }
 0x48c   : > { %v2797_v55 = vpop.eup %2412 }
 0x48d   : > { %v1324_v27 = vsel %vm1106_vm3, %v2797_v55, 0.0 }
 0x48e   : > { %1325 = vadd.xlane.f32.xlu1 %v1324_v27 }
 0x494   : > { %v2805_v61 = vpop.eup %2414 }
 0x495   : > { %v1330_v62 = vsel %vm1106_vm3, %v2805_v61, 0.0  ;;  %v2809_v63 = vpop.eup %2416 }
 0x49c   : > { %960 = vrot.lane.b32.xlu0 %v2701_v29, %s3034_s18  ;;  %v1327_v29 = vsel %vm1106_vm3, %v2809_v63, 0.0 }
 0x49f   : > { %958 = vrot.lane.b32.xlu1 %v2697_v28, %s3034_s18  ;;  %s2907_s18 = sshll.u32 %s3035_s19, 3  ;;  %s2210_s19 = sshll.u32 %s2618_s28, 7 }
 0x4a0   : > { %s514_s3 = scalar_lea.vmem [#allocation2], %s2907_s18 }
 0x4bb   : > { %1331 = vadd.xlane.f32.xlu0 %v1330_v62 }
 0x4c3   : > { %1328 = vadd.xlane.f32.xlu1 %v1327_v29 }
 0x50f   : > { %v1323_v28 = vpop.xlane.xlu0 %1322 }
 0x510   : > { %2418 = vrcp.f32 %v1323_v28 }
 0x513   : > { %v961_v3 = vpop.permute.xlu0 %960 }
 0x514   : > { %v982_v5 = vcombine.low %v957_v2, %v961_v3  ;;  %v983_v6 = vcombine.high %v957_v2, %v961_v3 }
 0x516   : > { %v990_v11 = vrot.slane %v982_v5, %v2714_v42  ;;  %v997_v12 = vrot.slane %v983_v6, %v2714_v42 }
 0x517   : > { %v1326_v4 = vpop.xlane.xlu1 %1325 }
 0x518   : > { %2420 = vrcp.f32 %v1326_v4 }
 0x51b   : > { %v959_v7 = vpop.permute.xlu1 %958 }
 0x51c   : > { %v966_v9 = vcombine.low %v955_v1, %v959_v7  ;;  %v967_v10 = vcombine.high %v955_v1, %v959_v7 }
 0x51d   : > { %v2419_v41 = vpop.eup %2418 }
 0x51e   : > { %v974_v13 = vrot.slane %v966_v9, %v2714_v42  ;;  %v981_v14 = vrot.slane %v967_v10, %v2714_v42  ;;  %v1337_v54 = vmul.f32 %v2419_v41, %v2793_v53 }
 0x520   : > { %v998_v15 = vcombine.low %v974_v13, %v990_v11  ;;  %v999_v16 = vcombine.high %v974_v13, %v990_v11  ;;  %v1014_v17 = vcombine.low %v981_v14, %v997_v12  ;;  %v1015_v18 = vcombine.high %v981_v14, %v997_v12 }
 0x521   : > { %v1341_v60 = vpack.c.bf16 %v1337_v54, %v1337_v54 }
 0x522   : > { %v1006_v19 = vrot.slane %v998_v15, %v2717_v48  ;;  %v1013_v20 = vrot.slane %v999_v16, %v2717_v48  ;;  %v1022_v21 = vrot.slane %v1014_v17, %v2717_v48  ;;  %v1029_v23 = vrot.slane %v1015_v18, %v2717_v48 }
 0x524   : > { %v1034_v24 = vcombine.low %v1006_v19, %v1013_v20  ;;  %v2175_v25 = vcombine.high %v1006_v19, %v1013_v20  ;;  %v1050_v26 = vcombine.low %v1022_v21, %v1029_v23  ;;  %v2176_v30 = vcombine.high %v1022_v21, %v1029_v23 }
 0x525   : > { %v2421_v47 = vpop.eup %2420 }
 0x526   : > { %v1041_v33 = vrot.slane %v1034_v24, %v2714_v42  ;;  %v1049_v34 = vrot.slane %v2175_v25, %v2714_v42  ;;  %v1057_v35 = vrot.slane %v1050_v26, %v2714_v42  ;;  %v1065_v36 = vrot.slane %v2176_v30, %v2714_v42 }
 0x527   : > { %v1338_v27 = vmul.f32 %v2421_v47, %v2797_v55 }
 0x528   : > { %v1066_v37 = vcombine.low %v1041_v33, %v1049_v34  ;;  %v1082_v38 = vcombine.low %v1057_v35, %v1065_v36  ;;  %v1067_v39 = vcombine.high %v1041_v33, %v1049_v34  ;;  %v1083_v40 = vcombine.high %v1057_v35, %v1065_v36 }
 0x529   : > { %v1342_v62 = vpack.c.bf16 %v1338_v27, %v1338_v27 }
 0x52a   : > { %v1074_v43 = vrot.slane %v1066_v37, %v2717_v48  ;;  %v1090_v44 = vrot.slane %v1082_v38, %v2717_v48  ;;  %v1081_v45 = vrot.slane %v1067_v39, %v2717_v48  ;;  %v1097_v46 = vrot.slane %v1083_v40, %v2717_v48  ;;  %v2396_v39 = vld [vmem:[%s3052_s6 + $0x8] sm:$0xff]  }
 0x52c   : > { %v1098_v49 = vcombine.low %v1074_v43, %v1090_v44  ;;  %v1099_v50 = vcombine.high %v1074_v43, %v1090_v44  ;;  %v1100_v51 = vcombine.low %v1081_v45, %v1097_v46  ;;  %v1101_v31 = vcombine.high %v1081_v45, %v1097_v46 }
 0x52e   : > { %v1102_v32 = vpack.c.bf16 %v1098_v49, %v1098_v49  ;;  %v1103_v52 = vpack.c.bf16 %v1099_v50, %v1099_v50  ;;  %v1104_v58 = vpack.c.bf16 %v1100_v51, %v1100_v51  ;;  %v1105_v59 = vpack.c.bf16 %v1101_v31, %v1101_v31  ;;  %v2397_v51 = vld [vmem:[%s3052_s6] sm:$0xff]   ;;  %s2015_s6 = scalar_lea.hbm %s3032_s16, %s2210_s19 }
 0x530   : > { %v1350_v56 = vsel %vm1348_vm4, %v1102_v32, 0  ;;  %v1396_v57 = vsel %vm1348_vm4, %v1103_v52, 0  ;;  %v1442_v53 = vsel %vm1348_vm4, %v1104_v58, 0  ;;  %v1488_v55 = vsel %vm1348_vm4, %v1105_v59, 0 }
 0x531   : > { %2284 = vmatpush3.bf16.msra.mxu1 %v1350_v56  ;;  %2290 = vmatpush3.bf16.msra.mxu0 %v1396_v57 }
 0x532   : > { %2295 = vmatprep.subr.bf16.mxu1 %v2494_v8  ;;  %2301 = vmatprep.subr.bf16.mxu0 %v2494_v8 }
 0x534   : > { %2286 = vmatmul.mubr.msk.bf16.vlgmr.msra.gmra.mxu1 %vm1106_vm3, %v1341_v60  ;;  %2292 = vmatmul.mubr.msk.bf16.vlgmr.msra.gmra.mxu0 %vm1106_vm3, %v1342_v62 }
 0x535   : > { %2296 = vmatpush3.bf16.msra.mxu1 %v1442_v53  ;;  %2302 = vmatpush3.bf16.msra.mxu0 %v1488_v55 }
 0x536   : > { %2303 = vmatprep.mubr.msk.bf16.mxu0 %vm2495_vm1, %v2494_v8  ;;  %2297 = vmatprep.mubr.msk.bf16.mxu1 %vm2495_vm1, %v2494_v8 }
 0x537   : > { %2307 = vmatprep.subr.bf16.mxu1 %v2494_v8  ;;  %2315 = vmatprep.subr.bf16.mxu0 %v2494_v8 }
 0x544   : > { %v1332_v29 = vpop.xlane.xlu0 %1331 }
 0x545   : > { %2422 = vrcp.f32 %v1332_v29 }
 0x54c   : > { %v1329_v1 = vpop.xlane.xlu1 %1328 }
 0x54d   : > { %2424 = vrcp.f32 %v1329_v1 }
 0x552   : > { %v2423_v28 = vpop.eup %2422 }
 0x553   : > { %v1340_v2 = vmul.f32 %v2423_v28, %v2805_v61 }
 0x555   : > { %v1344_v3 = vpack.c.bf16 %v1340_v2, %v1340_v2 }
 0x557   : > { %2304 = vmatmul.mubr.msk.bf16.vlgmr.msra.gmra.mxu0 %vm1106_vm3, %v1344_v3 }
 0x558   : > { %2319 = vmatprep.mubr.msk.bf16.mxu0 %vm2495_vm1, %v2494_v8 }
 0x55a   : > { %v2425_v4 = vpop.eup %2424 }
 0x55b   : > { %v1339_v5 = vmul.f32 %v2425_v4, %v2809_v63 }
 0x55d   : > { %v1343_v6 = vpack.c.bf16 %v1339_v5, %v1339_v5 }
 0x55f   : > { %2298 = vmatmul.mubr.msk.bf16.vlgmr.msra.gmra.mxu1 %vm1106_vm3, %v1343_v6 }
 0x560   : > { %2311 = vmatprep.mubr.msk.bf16.mxu1 %vm2495_vm1, %v2494_v8  ;;  %2308 = vmatpush3.bf16.msra.mxu1 %v2396_v39  ;;  %v2402_v39 = vld [vmem:[%s3028_s12 + $0x28] sm:$0xff]  }
 0x561   : > { %2309 = vmatprep.subr.bf16.mxu1 %v2494_v8 }
 0x564   : > { %2310 = vmatpush3.bf16.msra.mxu1 %v2397_v51 }
 0x565   : > { %2323 = vmatprep.subr.bf16.mxu1 %v2494_v8 }
 0x5f4   : > { %v1386_v7 = vpop.f32.mrf.mxu1  ;;  %v1432_v9 = vpop.f32.mrf.mxu0 }
 0x5f6   : > { %v2287_v10 = vpop.f32.mrf.mxu1  ;;  %v2293_v11 = vpop.f32.mrf.mxu0 }
 0x5f8   : > { %v1389_v61 = vpop.f32.mrf.mxu1  ;;  %v1435_v12 = vpop.f32.mrf.mxu0 }
 0x5fa   : > { %v2288_v13 = vpop.f32.mrf.mxu1  ;;  %v2294_v14 = vpop.f32.mrf.mxu0 }
 0x617   : > { %v1524_v15 = vpop.f32.mrf.mxu0 }
 0x618   : > { %v1546_v19 = vcombine.low %v1432_v9, %v1524_v15  ;;  %v1547_v63 = vcombine.high %v1432_v9, %v1524_v15 }
 0x619   : > { %v2305_v16 = vpop.f32.mrf.mxu0 }
 0x61a   : > { %v1554_v25 = vrot.slane %v1546_v19, %v2714_v42  ;;  %v1561_v26 = vrot.slane %v1547_v63, %v2714_v42  ;;  %v2398_v63 = vld [vmem:[%s3026_s10 + $0x8] sm:$0xff]  }
 0x61b   : > { %v1527_v17 = vpop.f32.mrf.mxu0  ;;  %2316 = vmatpush3.bf16.msra.mxu0 %v2398_v63 }
 0x61c   : > { %2317 = vmatprep.subr.bf16.mxu0 %v2494_v8 }
 0x61d   : > { %v2306_v18 = vpop.f32.mrf.mxu0 }
 0x61f   : > { %v1478_v20 = vpop.f32.mrf.mxu1 }
 0x620   : > { %v1530_v21 = vcombine.low %v1386_v7, %v1478_v20  ;;  %v1531_v23 = vcombine.high %v1386_v7, %v1478_v20  ;;  %v2187_v7 = vld [vmem:[%s3053_s7] ss:$0 sm:$0xff]  ;;  %s3056_s7 = sand.u32 1, %s2484_s25  }
 0x621   : > { %v2299_v24 = vpop.f32.mrf.mxu1  ;;  %v2399_v20 = vld [vmem:[%s3026_s10] sm:$0xff]  }
 0x622   : > { %v1538_v30 = vrot.slane %v1530_v21, %v2714_v42  ;;  %v1545_v33 = vrot.slane %v1531_v23, %v2714_v42  ;;  %2318 = vmatpush3.bf16.msra.mxu0 %v2399_v20 }
 0x623   : > { %v1481_v34 = vpop.f32.mrf.mxu1 }
 0x624   : > { %v1562_v35 = vcombine.low %v1538_v30, %v1554_v25  ;;  %v1563_v36 = vcombine.high %v1538_v30, %v1554_v25  ;;  %v1578_v37 = vcombine.low %v1545_v33, %v1561_v26  ;;  %v1579_v38 = vcombine.high %v1545_v33, %v1561_v26  ;;  %v2191_v26 = vld [vmem:[%s3054_s8] ss:$0 sm:$0xff] }
 0x625   : > { %v2300_v40 = vpop.f32.mrf.mxu1  ;;  %v2192_v33 = vld [vmem:[%s3025_s9] ss:$0 sm:$0xff] }
 0x626   : > { %v1570_v41 = vrot.slane %v1562_v35, %v2717_v48  ;;  %v1577_v43 = vrot.slane %v1563_v36, %v2717_v48  ;;  %v1586_v44 = vrot.slane %v1578_v37, %v2717_v48  ;;  %v1593_v45 = vrot.slane %v1579_v38, %v2717_v48  ;;  %v2400_v37 = vld [vmem:[%s3028_s12 + $0x38] sm:$0xff]   ;;  %v2401_v38 = vld [vmem:[%s3028_s12 + $0x30] sm:$0xff]   ;;  %v2403_v40 = vld [vmem:[%s3028_s12 + $0x20] sm:$0xff]  }
 0x628   : > { %v1598_v46 = vcombine.low %v1570_v41, %v1577_v43  ;;  %v2185_v47 = vcombine.high %v1570_v41, %v1577_v43  ;;  %v1614_v49 = vcombine.low %v1586_v44, %v1593_v45  ;;  %v2186_v50 = vcombine.high %v1586_v44, %v1593_v45  ;;  %v2404_v41 = vld [vmem:[%s3028_s12 + $0x18] sm:$0xff]   ;;  %v2405_v43 = vld [vmem:[%s3028_s12 + $0x10] sm:$0xff]   ;;  %v2406_v44 = vld [vmem:[%s3028_s12 + $0x8] sm:$0xff]  }
 0x629   : > { %v2407_v45 = vld [vmem:[%s3028_s12] sm:$0xff]  }
 0x62a   : > { %v1605_v31 = vrot.slane %v1598_v46, %v2714_v42  ;;  %v1613_v32 = vrot.slane %v2185_v47, %v2714_v42  ;;  %v1621_v52 = vrot.slane %v1614_v49, %v2714_v42  ;;  %v1629_v54 = vrot.slane %v2186_v50, %v2714_v42  ;;  %v2193_v46 = vld [vmem:[%s3027_s11] ss:$0 sm:$0xff] }
 0x62c   : > { %v1631_v27 = vcombine.high %v1605_v31, %v1613_v32  ;;  %v1647_v56 = vcombine.high %v1621_v52, %v1629_v54  ;;  %v1630_v57 = vcombine.low %v1605_v31, %v1613_v32  ;;  %v1646_v58 = vcombine.low %v1621_v52, %v1629_v54 }
 0x62e   : > { %v1645_v59 = vrot.slane %v1631_v27, %v2717_v48  ;;  %v1661_v60 = vrot.slane %v1647_v56, %v2717_v48  ;;  %v1638_v62 = vrot.slane %v1630_v57, %v2717_v48  ;;  %v1654_v53 = vrot.slane %v1646_v58, %v2717_v48 }
 0x630   : > { %v1664_v55 = vcombine.low %v1645_v59, %v1661_v60  ;;  %v1663_v29 = vcombine.high %v1638_v62, %v1654_v53  ;;  %v1662_v1 = vcombine.low %v1638_v62, %v1654_v53  ;;  %v1665_v42 = vcombine.high %v1645_v59, %v1661_v60  ;;  %v2197_v62 = vld [vmem:[%s3029_s13] ss:$0 sm:$0xff] }
 0x632   : > { %1671 = vrot.lane.b32.xlu1 %v1664_v55, %s2503_s29  ;;  %1667 = vrot.lane.b32.xlu0 %v1663_v29, %s2504_s21  ;;  %s3055_s21 = smov 64   ;;  %s2017_s29 = sshll.u32 %s514_s3, 4  ;;  %s2018_s29 = int_to_ptr.vmem [resolvable:$true] %s2017_s29 }
 0x633   : > { %s2432_s23 = scalar_lea.vmem %s2018_s29, 128  ;;  %p2439_p0 = scmp.lt.s32.totalorder %s2018_s29, %s2437_s2 }
 0x634   : > { %p2433_p11 = scmp.ne.s32.totalorder %s2018_s29, %s2432_s23 }
 0x636   : > { %1675 = vrot.lane.b32.xlu1 %v1665_v42, %s2505_s22  ;;  %s2000_s22 = scalar_lea.sflag [#allocation3], %s3056_s7  ;;  %p2434_p12 = pnand %p2433_p11, %p2635_p5 }
 0x638   : > { %p2435_p13 = pneg %p2434_p12 }
 0x6a4   : > { %v1672_v28 = vpop.permute.xlu1 %1671  ;;  %v1668_v2 = vpop.permute.xlu0 %1667 }
 0x6a5   : > { %v1678_v3 = vsel %vm1106_vm3, %v1662_v1, %v1668_v2 }
 0x6a6   : > { %v1680_v5 = vsel %vm1679_vm5, %v1678_v3, %v1672_v28 }
 0x6a8   : > { %v1676_v4 = vpop.permute.xlu1 %1675 }
 0x6a9   : > { %v1682_v6 = vsel %vm1681_vm6, %v1680_v5, %v1676_v4 }
 0x6aa   : > { %v1683_v48 = vpack.c.bf16 %v1682_v6, %v1682_v6 }
 0x6ac   : > { %2312 = vmatmul.mubr.msk.bf16.vlgmr.msra.gmra.mxu1 %vm529_vm0, %v1683_v48 }
 0x6ad   : > { %2339 = vmatprep.mubr.msk.bf16.mxu1 %vm2495_vm1, %v2494_v8  ;;  %2324 = vmatpush3.bf16.msra.mxu1 %v2400_v37 }
 0x6ae   : > { %2325 = vmatprep.subr.bf16.mxu1 %v2494_v8 }
 0x6b1   : > { %2326 = vmatpush3.bf16.msra.mxu1 %v2401_v38 }
 0x6b2   : > { %2327 = vmatprep.subr.bf16.mxu1 %v2494_v8 }
 0x6b5   : > { %2328 = vmatpush3.bf16.msra.mxu1 %v2402_v39 }
 0x6b6   : > { %2329 = vmatprep.subr.bf16.mxu1 %v2494_v8 }
 0x6b9   : > { %2330 = vmatpush3.bf16.msra.mxu1 %v2403_v40 }
 0x6ba   : > { %2331 = vmatprep.subr.bf16.mxu1 %v2494_v8 }
 0x6bd   : > { %2332 = vmatpush3.bf16.msra.mxu1 %v2404_v41 }
 0x6be   : > { %2333 = vmatprep.subr.bf16.mxu1 %v2494_v8 }
 0x6c1   : > { %2334 = vmatpush3.bf16.msra.mxu1 %v2405_v43 }
 0x6c2   : > { %2335 = vmatprep.subr.bf16.mxu1 %v2494_v8 }
 0x6c5   : > { %2336 = vmatpush3.bf16.msra.mxu1 %v2406_v44 }
 0x6c6   : > { %2337 = vmatprep.subr.bf16.mxu1 %v2494_v8 }
 0x6c9   : > { %2338 = vmatpush3.bf16.msra.mxu1 %v2407_v45 }
 0x76c   : > { %v1744_v9 = vpop.f32.mrf.mxu1 }
 0x76d   : > { %v1745_v10 = vadd.f32 %v2187_v7, %v1744_v9 }
 0x76e   : > { %v2313_v11 = vpop.f32.mrf.mxu1 }
 0x76f   : > { %v2885_v61 = vadd.f32 %v1745_v10, %v2650_v0  ;;  %v2893_v0 = vpack.c.bf16 %v2682_v22, %v2682_v22 }
 0x770   : > { %v1747_v12 = vpop.f32.mrf.mxu1 }
 0x771   : > { %v1753_v13 = vsel %vm529_vm0, %v2885_v61, 0.0  ;;  %v2206_v12 = vld [vmem:[%s3030_s14] ss:$0 sm:$0xff] }
 0x772   : > { %1754 = vadd.xlane.f32.xlu0 %v1753_v13  ;;  %v2314_v14 = vpop.f32.mrf.mxu1 }
 0x773   : > { %v2207_v14 = vld [vmem:[%s3031_s15] ss:$0 sm:$0xff] }
 0x7fb   : > { %v1755_v15 = vpop.xlane.xlu0 %1754 }
 0x7fc   : > { %v1756_v16 = vmul.f32 0.03125, %v1755_v15 }
 0x7fe   : > { %v1757_v17 = vsub.f32 %v2885_v61, %v1756_v16 }
 0x800   : > { %v1758_v18 = vmul.f32 %v1757_v17, %v1757_v17 }
 0x802   : > { %v1759_v19 = vsel %vm529_vm0, %v1758_v18, 0.0 }
 0x803   : > { %1760 = vadd.xlane.f32.xlu1 %v1759_v19 }
 0x814   : > { %629 = vrot.lane.b32.xlu1 %v2893_v0, %s2499_s30  ;;  %s2910_s30 = scalar_lea.vmem [#allocation4], %s2907_s18  ;;  %s2438_s18 = scalar_lea.vmem %s2437_s2, 256 }
 0x815   : > { %p2440_p1 = scmp.lt.s32.totalorder %s2438_s18, %s2432_s23 }
 0x817   : > { %p2441_p2 = por %p2440_p1, %p2439_p0 }
 0x819   : > { %p2442_p3 = pnand %p2441_p2, %p2435_p13 }
 0x88c   : > { %v1761_v22 = vpop.xlane.xlu1 %1760 }
 0x88d   : > { %v1762_v21 = vmul.f32 0.03125, %v1761_v22 }
 0x88f   : > { %v1763_v23 = vadd.f32 1e-05, %v1762_v21 }
 0x890   : > { %v630_v24 = vpop.permute.xlu1 %629 }
 0x891   : > { %2426 = vrsqrt.f32 %v1763_v23  ;;  %633 = vst.msk [vmem:[%s2910_s30] sm:$0xf] %vm632_vm7, %v630_v24 }
 0x89e   : > { %v2427_v25 = vpop.eup %2426 }
 0x89f   : > { %v1765_v30 = vmul.f32 %v2427_v25, %v1757_v17 }
 0x8a1   : > { %v1772_v34 = vmul.f32 %v2191_v26, %v1765_v30 }
 0x8a3   : > { %v1779_v35 = vadd.f32 %v2192_v33, %v1772_v34 }
 0x8a5   : > { %v1780_v36 = vpack.c.bf16 %v1779_v35, %v1779_v35 }
 0x8a7   : > { %2320 = vmatmul.mubr.msk.bf16.vlgmr.msra.gmra.mxu0 %vm529_vm0, %v1780_v36 }
 0x967   : > { %v1841_v47 = vpop.f32.mrf.mxu0 }
 0x968   : > { %v1842_v49 = vadd.f32 %v2193_v46, %v1841_v47 }
 0x969   : > { %v2321_v50 = vpop.f32.mrf.mxu0 }
 0x96a   : > { %v1848_v51 = vmul.f32 %v1842_v49, %v1842_v49  ;;  %v1847_v58 = vmul.f32 0.5, %v1842_v49 }
 0x96b   : > { %v1844_v31 = vpop.f32.mrf.mxu0 }
 0x96c   : > { %v1849_v32 = vmul.f32 %v1848_v51, %v1842_v49 }
 0x96d   : > { %v2322_v52 = vpop.f32.mrf.mxu0 }
 0x96e   : > { %v1850_v54 = vmul.f32 0.044715, %v1849_v32 }
 0x970   : > { %v1851_v27 = vadd.f32 %v1850_v54, %v1842_v49 }
 0x972   : > { %v1852_v56 = vmul.f32 0.7978846, %v1851_v27 }
 0x974   : > { %2428 = vtanh.f32 %v1852_v56 }
 0x981   : > { %v2429_v57 = vpop.eup %2428 }
 0x982   : > { %v1854_v59 = vadd.f32 1.0, %v2429_v57 }
 0x984   : > { %v1855_v8 = vmul.f32 %v1854_v59, %v1847_v58 }
 0x986   : > { %v1856_v60 = vpack.c.bf16 %v1855_v8, %v1855_v8 }
 0x988   : > { %2340 = vmatmul.mubr.bf16.vlgmr.msra.gmra.mxu1 %v1856_v60 }
 0xa48   : > { %v1962_v53 = vpop.f32.mrf.mxu1 }
 0xa49   : > { %v1963_v55 = vadd.f32 %v2197_v62, %v1962_v53 }
 0xa4a   : > { %v2341_v29 = vpop.f32.mrf.mxu1 }
 0xa4b   : > { %v1968_v1 = vadd.f32 %v1963_v55, %v2885_v61 }
 0xa4c   : > { %v1965_v42 = vpop.f32.mrf.mxu1 }
 0xa4d   : > { %v1971_v28 = vsel %vm529_vm0, %v1968_v1, 0.0 }
 0xa4e   : > { %1972 = vadd.xlane.f32.xlu0 %v1971_v28  ;;  %v2342_v2 = vpop.f32.mrf.mxu1 }
 0xad7   : > { %v1973_v3 = vpop.xlane.xlu0 %1972 }
 0xad8   : > { %v1974_v4 = vmul.f32 0.03125, %v1973_v3 }
 0xada   : > { %v1975_v5 = vsub.f32 %v1968_v1, %v1974_v4 }
 0xadc   : > { %v1976_v6 = vmul.f32 %v1975_v5, %v1975_v5 }
 0xade   : > { %v1977_v48 = vsel %vm529_vm0, %v1976_v6, 0.0 }
 0xadf   : > { %1978 = vadd.xlane.f32.xlu0 %v1977_v48 }
 0xaf5   : > { %634 = vrot.lane.b32.xlu0 %v2893_v0, %s3055_s21 }
 0xb68   : > { %v1979_v7 = vpop.xlane.xlu0 %1978 }
 0xb69   : > { %v1980_v9 = vmul.f32 0.03125, %v1979_v7 }
 0xb6b   : > { %v1981_v10 = vadd.f32 1e-05, %v1980_v9 }
 0xb6c   : > { %v635_v11 = vpop.permute.xlu0 %634 }
 0xb6d   : > { %2430 = vrsqrt.f32 %v1981_v10  ;;  %2170 = vst.msk [vmem:[%s2910_s30 + $0x4] sm:$0xf] %vm632_vm7, %v635_v11 }
 0xb7a   : > { %v2431_v61 = vpop.eup %2430 }
 0xb7b   : > { %v1983_v13 = vmul.f32 %v2431_v61, %v1975_v5 }
 0xb7d   : > { %v1990_v15 = vmul.f32 %v2206_v12, %v1983_v13 }
 0xb7f   : > { %v1997_v16 = vadd.f32 %v2207_v14, %v1990_v15 }
 0xb81   : > { %1998 = vst.msk [vmem:[%s514_s3] sm:$0xff] %vm529_vm0, %v1997_v16 }
 0xb82   : > { %2445 = shalt.err (!%p2442_p3)
}
 0xb83   : > { %s2446_s5 = scalar_lea.hbm %s2015_s6, 128  ;;  %s2450_s3 = scalar_lea.hbm %s3032_s16, 256 }
 0xb84   : > { %p2447_p4 = scmp.ne.s32.totalorder %s2015_s6, %s2446_s5  ;;  %p2451_p9 = scmp.lt.s32.totalorder %s2015_s6, %s3032_s16 }
 0xb85   : > { %p2452_p10 = scmp.lt.s32.totalorder %s2450_s3, %s2446_s5 }
 0xb86   : > { %p2448_p7 = pnand %p2447_p4, %p2635_p5 }
 0xb87   : > { %p2453_p11 = por %p2452_p10, %p2451_p9 }
 0xb88   : > { %p2449_p8 = pneg %p2448_p7 }
 0xb8a   : > { %p2454_p12 = pnand %p2453_p11, %p2449_p8 }
 0xb8c   : > { %2457 = shalt.err (!%p2454_p12)
}
 0xb8d   : > { %2343 = dma.vmem_to_hbm [thread:$0]  (%p2635_p5), %s2018_s29, 128, %s2015_s6, %s2000_s22   ;;  %v2043_v17 = vld [vmem:[%s2910_s30] sm:$0xf] (%p2635_p5)  ;;  %v2045_v18 = vld [vmem:[%s2910_s30 + $0x4] sm:$0xf] (%p2635_p5) }
 0xb8e   : > { %2023 = sbr.rel (!%p2635_p5) target bundleno = 2963 (0xb93), region = 88  ;;  %s2211_s23 = sshll.u32 (%p2635_p5), %s2618_s28, 2 }
 0xb8f   : > { %s2115_s8 = scalar_lea.vmem (%p2635_p5), %s3033_s17, %s2211_s23 }
 0xb90   : > { %2212 = vst [vmem:[%s2115_s8 + $0x10] sm:$0xf] (%p2635_p5), %v2043_v17  ;;  %2213 = vst [vmem:[%s2115_s8 + $0x18] sm:$0xf] (%p2635_p5), %v2045_v18 }
 0xb93 PF: > { %p2349_p13 = scmp.ge.s32.totalorder %s2492_s27, 2  ;;  %s2080_s6 = sand.u32 1, %s2480_s24  }
 0xb94   : > { %s2081_s1 = scalar_lea.sflag [#allocation3], %s2080_s6 }
 0xb95   : > { %p2346_p5 = pnand %p2349_p13, %p2639_p6 }
 0xb97   : > { %p2347_p0 = pneg %p2346_p5 }
 0xb99   : > { %2475 = dma.done.wait (%p2347_p0), %s2081_s1, 128  }
 0xb9a   : > { %2477 = vsyncadd (%p2347_p0), %s2081_s1, 4294967168  ;;  %s3057_s28 = sld [smem:[#allocation6_spill]]  ;;  %p28_p1 = scmp.ge.s32.totalorder %s2622_s0, 4  }
 0xb9b   : > { %s3058_s24 = smov %s2484_s25  ;;  %s3059_s25 = smov %s2488_s26 }
 0xb9c   : > { %s3061_s27 = smov %s2622_s0  ;;  %30 = sbr.rel (!%p28_p1) target bundleno = 12 (0xc), region = 169 }
 0xba0   : > { %s3060_s26 = smov %s3057_s28 }
 0xba1   :  { %2093 = vsyncpa [#allocation3], 1 }
 0xba2   :  { %2095 = vsyncpa [#allocation3 + $0x1], 1 }

// kernel: _lambda_.2
= control target key start
LH: loop header
LB: loop body
LE: loop exit
PB: predicated region body
PF: predicated region fallthrough
CT: control target
= control target key end

     0   :  { %s2421_s17 = smov 0   ;;  %s2423_s1 = smov 0   ;;  %s2788_s0 = inlined_call_operand.vmem [shape: f32[2,8,32], index: 0, kind: input, shape index: {}]   ;;  %s2789_s1 = inlined_call_operand.vmem [shape: bf16[2,2,2,8,32], index: 1, kind: input, shape index: {}, may-alias: {1,15}]   ;;  %s2790_s2 = inlined_call_operand.vmem [shape: f32[1,32], index: 2, kind: input, shape index: {}]   ;;  %s2791_s3 = inlined_call_operand.vmem [shape: f32[1,32], index: 3, kind: input, shape index: {}]   ;;  %s2792_s4 = inlined_call_operand.vmem [shape: bf16[32,96], index: 4, kind: input, shape index: {}]   ;;  %s2793_s5 = inlined_call_operand.vmem [shape: f32[1,96], index: 5, kind: input, shape index: {}]   ;;  %s2794_s6 = inlined_call_operand.vmem [shape: bf16[32,32], index: 6, kind: input, shape index: {}]   ;;  %s2795_s7 = inlined_call_operand.vmem [shape: f32[1,32], index: 7, kind: input, shape index: {}]   ;;  %s2796_s8 = inlined_call_operand.vmem [shape: f32[1,32], index: 8, kind: input, shape index: {}]   ;;  %s2797_s9 = inlined_call_operand.vmem [shape: f32[1,32], index: 9, kind: input, shape index: {}]   ;;  %s2798_s10 = inlined_call_operand.vmem [shape: bf16[32,128], index: 10, kind: input, shape index: {}]   ;;  %s2799_s11 = inlined_call_operand.vmem [shape: f32[1,128], index: 11, kind: input, shape index: {}]   ;;  %s2800_s12 = inlined_call_operand.vmem [shape: bf16[128,32], index: 12, kind: input, shape index: {}]   ;;  %s2801_s13 = inlined_call_operand.vmem [shape: f32[1,32], index: 13, kind: input, shape index: {}]   ;;  %s2802_s14 = inlined_call_operand.vmem [shape: f32[2,8,32], index: 14, kind: output, shape index: {0}]   ;;  %s2803_s15 = inlined_call_operand.vmem [shape: bf16[2,2,2,8,32], index: 15, kind: output, shape index: {1}, may-alias: {1,15}]  }
   0x1   :  { %s2425_s18 = smov 0  }
   0x2 LB: > { %s2434_s19 = sadd.s32 4294967295, %s2327_s18   ;;  %s2436_s20 = sadd.s32 1, %s2327_s18   ;;  %s2327_s18 = sphi %s2425_s18, %s2807_s18   ;;  %s2323_s1 = sphi %s2423_s1, %s2806_s1   ;;  %s2319_s17 = sphi %s2421_s17, %s2805_s17  }
   0x3   : > { %s334_s21 = ssub.s32 %s2327_s18, %s2436_s20  ;;  %s337_s22 = sadd.s32 1, %s2323_s1 }
   0x4   : > { %p335_p0 = scmp.eq.s32.totalorder %s334_s21, 0  ;;  %p347_p1 = scmp.ne.s32.totalorder %s2323_s1, %s2319_s17 }
   0x5   : > { %p348_p2 = scmp.eq.s32.totalorder %s2434_s19, 1  ;;  %p2055_p3 = scmp.ge.s32.totalorder %s2327_s18, 1 }
   0x6   : > { %s2444_s23 = scalar_select %p335_p0, %s2323_s1, %s337_s22  }
   0x7   : > { %p2446_p4 = por %p348_p2, %p347_p1  ;;  %p415_p5 = scmp.lt.s32.totalorder %s2327_s18, 3 }
   0x9   : > { %p416_p6 = pnand %p2055_p3, %p415_p5 }
   0xa   : > { %p463_p7 = scmp.lt.s32.totalorder (!%p416_p6), %s2434_s19, 1  ;;  %s2331_s18 = smov (!%p416_p6), 104  }
   0xb   : > { %419 = sbr.rel (%p416_p6) target bundleno = 2626 (0xa42), region = 72  ;;  %s2332_s21 = smov (!%p416_p6), 120  }
   0xc   : > { %s2333_s22 = smov (!%p416_p6), 112   ;;  %s2334_s27 = smov (!%p416_p6), 96  }
   0xd   : > { %s2337_s28 = smov (!%p416_p6), 64  }
  0x10   : > { %s2452_s25 = scalar_select %p463_p7, %s2434_s19, 1  ;;  %vm475_vm0 = vcmask 261120   ;;  %v2269_v7 = vld [vmem:[%s2792_s4 + $0x8] sm:$0xff]   ;;  %v2329_v8 = vmov 0.0   ;;  %vm2330_vm1 = vmmov 0   ;;  %v2270_v9 = vld [vmem:[%s2792_s4] sm:$0xff]   ;;  %v586_v30 = vlaneseq }
  0x11   : > { %2141 = vmatprep.subr.bf16.mxu0 %v2329_v8  ;;  %2145 = vmatprep.mubr.msk.bf16.mxu0 %vm2330_vm1, %v2329_v8  ;;  %v2059_v14 = vld [vmem:[%s2790_s2] ss:$0 sm:$0xff]  ;;  %v2335_v34 = vmov 1983009808   ;;  %v2336_v37 = vmov 1934713408  }
  0x12   : > { %s2057_s26 = sshll.u32 %s2452_s25, 3  ;;  %2142 = vmatpush3.bf16.msra.mxu0 %v2269_v7  ;;  %2161 = vmatprep.subr.bf16.mxu1 %v2329_v8  ;;  %v2060_v16 = vld [vmem:[%s2791_s3] ss:$0 sm:$0xff]  ;;  %v2517_v31 = vshrl.u32 %v586_v30, 7  ;;  %v2519_v32 = vand.u32 127, %v586_v30  ;;  %v604_v35 = vunpack.c.l.s4 %v2335_v34  ;;  %v636_v38 = vunpack.c.l.s4 %v2336_v37 }
  0x13   : > { %s466_s29 = scalar_lea.vmem %s2788_s0, %s2057_s26  ;;  %2143 = vmatprep.subr.bf16.mxu0 %v2329_v8  ;;  %2163 = vmatprep.mubr.msk.bf16.mxu1 %vm2330_vm1, %v2329_v8  ;;  %v2061_v20 = vld [vmem:[%s2793_s5] ss:$0 sm:$0xff]  ;;  %vm1052_vm3 = vcmask 64512   ;;  %vm1294_vm4 = vcmask 1043456   ;;  %vm1625_vm5 = vcmask 130048   ;;  %vm1627_vm6 = vcmask 195584  }
  0x14   : > { %v2460_v0 = vld [vmem:[%s466_s29] sm:$0xff]  ;;  %vm590_vm2 = vcmp.le.s32.totalorder %v2519_v32, %v2517_v31  ;;  %v605_v39 = vunpack.c.0.s8 %v604_v35  ;;  %v637_v41 = vunpack.c.0.s8 %v636_v38  ;;  %s2340_s29 = smov 24   ;;  %vm578_vm7 = vcmask 257024  }
  0x15   : > { %v476_v1 = vsel %vm475_vm0, %v2460_v0, 0.0 }
  0x16   : > { %477 = vadd.xlane.f32.xlu0 %v476_v1  ;;  %2144 = vmatpush3.bf16.msra.mxu0 %v2270_v9  ;;  %v2524_v42 = vsub.s32 %v605_v39, %v2517_v31  ;;  %v2527_v48 = vsub.s32 %v637_v41, %v2517_v31 }
  0x17   : > { %2149 = vmatprep.subr.bf16.mxu0 %v2329_v8 }
  0x9f   : > { %v478_v2 = vpop.xlane.xlu0 %477 }
  0xa0   : > { %v480_v3 = vmul.f32 0.03125, %v478_v2 }
  0xa2   : > { %v481_v4 = vsub.f32 %v2460_v0, %v480_v3 }
  0xa4   : > { %v482_v5 = vmul.f32 %v481_v4, %v481_v4 }
  0xa6   : > { %v483_v6 = vsel %vm475_vm0, %v482_v5, 0.0 }
  0xa7   : > { %484 = vadd.xlane.f32.xlu0 %v483_v6 }
 0x130   : > { %v485_v10 = vpop.xlane.xlu0 %484 }
 0x131   : > { %v486_v11 = vmul.f32 0.03125, %v485_v10 }
 0x133   : > { %v487_v12 = vadd.f32 1e-05, %v486_v11 }
 0x135   : > { %2283 = vrsqrt.f32 %v487_v12 }
 0x142   : > { %v2284_v13 = vpop.eup %2283 }
 0x143   : > { %v489_v15 = vmul.f32 %v2284_v13, %v481_v4 }
 0x145   : > { %v496_v17 = vmul.f32 %v2059_v14, %v489_v15 }
 0x147   : > { %v503_v18 = vadd.f32 %v2060_v16, %v496_v17 }
 0x149   : > { %v504_v19 = vpack.c.bf16 %v503_v18, %v503_v18 }
 0x14b   : > { %2146 = vmatmul.mubr.msk.bf16.vlgmr.msra.gmra.mxu0 %vm475_vm0, %v504_v19 }
 0x14c   : > { %2151 = vmatprep.mubr.msk.bf16.mxu0 %vm2330_vm1, %v2329_v8 }
 0x20b   : > { %v565_v21 = vpop.f32.mrf.mxu0 }
 0x20c   : > { %v2492_v22 = vadd.f32 %v2061_v20, %v565_v21 }
 0x20d   : > { %v2147_v23 = vpop.f32.mrf.mxu0 }
 0x20e   : > { %746 = vrot.lane.b32.xlu0 %v2492_v22, %s2331_s18  ;;  %742 = vrot.lane.b32.xlu1 %v2492_v22, %s2332_s21  ;;  %v2497_v25 = vmul.f32 0.35355338, %v2492_v22 }
 0x20f   : > { %v568_v24 = vpop.f32.mrf.mxu0 }
 0x211   : > { %v2148_v26 = vpop.f32.mrf.mxu0 }
 0x212   : > { %744 = vrot.lane.b32.xlu1 %v2492_v22, %s2333_s22  ;;  %598 = vrot.lane.b32.xlu0 %v2497_v25, %s2331_s18  ;;  %s460_s18 = sand.u32 1, %s2319_s17  }
 0x216   : > { %748 = vrot.lane.b32.xlu1 %v2492_v22, %s2334_s27 }
 0x280   : > { %v2503_v27 = vpop.permute.xlu1 %742  ;;  %v2511_v29 = vpop.permute.xlu0 %746 }
 0x281   : > { %750 = vrot.lane.b32.xlu1 %v2503_v27, %s2334_s27 }
 0x284   : > { %v2507_v28 = vpop.permute.xlu1 %744  ;;  %v599_v58 = vpop.permute.xlu0 %598 }
 0x285   : > { %752 = vrot.lane.b32.xlu1 %v2507_v28, %s2334_s27 }
 0x288   : > { %v749_v33 = vpop.permute.xlu1 %748 }
 0x289   : > { %754 = vrot.lane.b32.xlu1 %v2511_v29, %s2334_s27 }
 0x28d   : > { %592 = vrot.lane.b32.xlu1 %v2497_v25, %s2332_s21  ;;  %s2338_s21 = smov 16  }
 0x291   : > { %595 = vrot.lane.b32.xlu1 %v2497_v25, %s2333_s22  ;;  %s2339_s22 = smov 8  }
 0x2f3   : > { %v751_v36 = vpop.permute.xlu1 %750 }
 0x2f7   : > { %v753_v40 = vpop.permute.xlu1 %752 }
 0x2f8   : > { %v760_v43 = vcombine.low %v749_v33, %v753_v40  ;;  %v761_v44 = vcombine.high %v749_v33, %v753_v40 }
 0x2fa   : > { %v768_v49 = vrot.slane %v760_v43, %v2524_v42  ;;  %v775_v50 = vrot.slane %v761_v44, %v2524_v42 }
 0x2fb   : > { %v755_v45 = vpop.permute.xlu1 %754 }
 0x2fc   : > { %v776_v46 = vcombine.low %v751_v36, %v755_v45  ;;  %v777_v47 = vcombine.high %v751_v36, %v755_v45 }
 0x2fe   : > { %v784_v51 = vrot.slane %v776_v46, %v2524_v42  ;;  %v791_v52 = vrot.slane %v777_v47, %v2524_v42 }
 0x2ff   : > { %v593_v53 = vpop.permute.xlu1 %592 }
 0x300   : > { %v792_v54 = vcombine.low %v768_v49, %v784_v51  ;;  %v793_v55 = vcombine.high %v768_v49, %v784_v51  ;;  %v808_v56 = vcombine.low %v775_v50, %v791_v52  ;;  %v809_v57 = vcombine.high %v775_v50, %v791_v52 }
 0x301   : > { %v617_v63 = vcombine.low %v593_v53, %v599_v58  ;;  %v618_v1 = vcombine.high %v593_v53, %v599_v58 }
 0x302   : > { %v800_v59 = vrot.slane %v792_v54, %v2527_v48  ;;  %v807_v60 = vrot.slane %v793_v55, %v2527_v48  ;;  %v816_v61 = vrot.slane %v808_v56, %v2527_v48  ;;  %v823_v62 = vrot.slane %v809_v57, %v2527_v48 }
 0x303   : > { %v596_v2 = vpop.permute.xlu1 %595  ;;  %v625_v14 = vrot.slane %v617_v63, %v2524_v42  ;;  %v632_v15 = vrot.slane %v618_v1, %v2524_v42 }
 0x304   : > { %v828_v3 = vcombine.low %v800_v59, %v807_v60  ;;  %v2069_v4 = vcombine.high %v800_v59, %v807_v60  ;;  %v844_v5 = vcombine.low %v816_v61, %v823_v62  ;;  %v2070_v6 = vcombine.high %v816_v61, %v823_v62 }
 0x305   : > { %v601_v7 = vcombine.low %v2497_v25, %v596_v2  ;;  %v602_v9 = vcombine.high %v2497_v25, %v596_v2 }
 0x306   : > { %v835_v10 = vrot.slane %v828_v3, %v2524_v42  ;;  %v843_v11 = vrot.slane %v2069_v4, %v2524_v42  ;;  %v851_v12 = vrot.slane %v844_v5, %v2524_v42  ;;  %v859_v13 = vrot.slane %v2070_v6, %v2524_v42 }
 0x307   : > { %v609_v16 = vrot.slane %v601_v7, %v2524_v42  ;;  %v616_v17 = vrot.slane %v602_v9, %v2524_v42 }
 0x308   : > { %v860_v18 = vcombine.low %v835_v10, %v843_v11  ;;  %v876_v19 = vcombine.low %v851_v12, %v859_v13  ;;  %v861_v20 = vcombine.high %v835_v10, %v843_v11  ;;  %v877_v21 = vcombine.high %v851_v12, %v859_v13 }
 0x309   : > { %v633_v23 = vcombine.low %v609_v16, %v625_v14  ;;  %v634_v24 = vcombine.high %v609_v16, %v625_v14  ;;  %v649_v25 = vcombine.low %v616_v17, %v632_v15  ;;  %v650_v26 = vcombine.high %v616_v17, %v632_v15 }
 0x30a   : > { %v868_v30 = vrot.slane %v860_v18, %v2527_v48  ;;  %v884_v33 = vrot.slane %v876_v19, %v2527_v48  ;;  %v875_v34 = vrot.slane %v861_v20, %v2527_v48  ;;  %v891_v35 = vrot.slane %v877_v21, %v2527_v48 }
 0x30b   : > { %v641_v36 = vrot.slane %v633_v23, %v2527_v48  ;;  %v648_v37 = vrot.slane %v634_v24, %v2527_v48  ;;  %v657_v38 = vrot.slane %v649_v25, %v2527_v48  ;;  %v664_v39 = vrot.slane %v650_v26, %v2527_v48 }
 0x30c   : > { %v892_v40 = vcombine.low %v868_v30, %v884_v33  ;;  %v894_v41 = vcombine.low %v875_v34, %v891_v35  ;;  %v893_v56 = vcombine.high %v868_v30, %v884_v33  ;;  %v895_v9 = vcombine.high %v875_v34, %v891_v35 }
 0x30d   : > { %v669_v43 = vcombine.low %v641_v36, %v648_v37  ;;  %v2067_v44 = vcombine.high %v641_v36, %v648_v37  ;;  %v685_v45 = vcombine.low %v657_v38, %v664_v39  ;;  %v2068_v46 = vcombine.high %v657_v38, %v664_v39 }
 0x30e   : > { %v896_v47 = vpack.c.bf16 %v892_v40, %v892_v40  ;;  %v898_v49 = vpack.c.bf16 %v894_v41, %v894_v41  ;;  %v897_v3 = vpack.c.bf16 %v893_v56, %v893_v56  ;;  %v899_v11 = vpack.c.bf16 %v895_v9, %v895_v9 }
 0x30f   : > { %v676_v50 = vrot.slane %v669_v43, %v2524_v42  ;;  %v684_v51 = vrot.slane %v2067_v44, %v2524_v42  ;;  %v692_v52 = vrot.slane %v685_v45, %v2524_v42  ;;  %v700_v53 = vrot.slane %v2068_v46, %v2524_v42 }
 0x310   : > { %v1057_v54 = vsel %vm1052_vm3, %v896_v47, 0  ;;  %v1149_v55 = vsel %vm1052_vm3, %v898_v49, 0  ;;  %v1103_v7 = vsel %vm1052_vm3, %v897_v3, 0  ;;  %v1195_v13 = vsel %vm1052_vm3, %v899_v11, 0 }
 0x311   : > { %v701_v57 = vcombine.low %v676_v50, %v684_v51  ;;  %v717_v58 = vcombine.low %v692_v52, %v700_v53  ;;  %2150 = vmatpush3.bf16.xpose.msra.mxu0 %v1057_v54  ;;  %2162 = vmatpush3.bf16.xpose.msra.mxu1 %v1149_v55  ;;  %v702_v59 = vcombine.high %v676_v50, %v684_v51 }
 0x312   : > { %2155 = vmatprep.subr.bf16.mxu0 %v2329_v8  ;;  %v718_v60 = vcombine.high %v692_v52, %v700_v53  ;;  %2173 = vmatprep.subr.bf16.mxu1 %v2329_v8 }
 0x313   : > { %v709_v61 = vrot.slane %v701_v57, %v2527_v48  ;;  %v725_v62 = vrot.slane %v717_v58, %v2527_v48  ;;  %v716_v63 = vrot.slane %v702_v59, %v2527_v48 }
 0x314   : > { %v732_v1 = vrot.slane %v718_v60, %v2527_v48 }
 0x315   : > { %v733_v2 = vcombine.low %v709_v61, %v725_v62  ;;  %v734_v10 = vcombine.high %v709_v61, %v725_v62 }
 0x316   : > { %v735_v4 = vcombine.low %v716_v63, %v732_v1  ;;  %v736_v14 = vcombine.high %v716_v63, %v732_v1 }
 0x317   : > { %v737_v5 = vpack.c.bf16 %v733_v2, %v733_v2  ;;  %v738_v12 = vpack.c.bf16 %v734_v10, %v734_v10 }
 0x318   : > { %v739_v6 = vpack.c.bf16 %v735_v4, %v735_v4  ;;  %v740_v15 = vpack.c.bf16 %v736_v14, %v736_v14 }
 0x319   : > { %2152 = vmatmul.mubr.msk.bf16.vlgmr.msra.gmra.mxu0 %vm1052_vm3, %v737_v5 }
 0x31a   : > { %2164 = vmatmul.mubr.msk.bf16.vlgmr.msra.gmra.mxu1 %vm1052_vm3, %v739_v6  ;;  %2156 = vmatpush3.bf16.xpose.msra.mxu0 %v1103_v7 }
 0x31b   : > { %2157 = vmatprep.mubr.msk.bf16.mxu0 %vm2330_vm1, %v2329_v8  ;;  %2167 = vmatprep.subr.bf16.mxu0 %v2329_v8 }
 0x31c   : > { %2175 = vmatprep.mubr.msk.bf16.mxu1 %vm2330_vm1, %v2329_v8 }
 0x321   : > { %2158 = vmatmul.mubr.msk.bf16.vlgmr.msra.gmra.mxu0 %vm1052_vm3, %v738_v12 }
 0x322   : > { %2168 = vmatpush3.bf16.xpose.msra.mxu0 %v1195_v13  ;;  %2169 = vmatprep.mubr.msk.bf16.mxu0 %vm2330_vm1, %v2329_v8 }
 0x323   : > { %2179 = vmatprep.subr.bf16.mxu0 %v2329_v8 }
 0x329   : > { %2170 = vmatmul.mubr.msk.bf16.vlgmr.msra.gmra.mxu0 %vm1052_vm3, %v740_v15 }
 0x32a   : > { %2181 = vmatprep.mubr.msk.bf16.mxu0 %vm2330_vm1, %v2329_v8 }
 0x3d9   : > { %v1093_v16 = vpop.f32.mrf.mxu0 }
 0x3da   : > { %v1239_v17 = vsel %vm590_vm2, %v1093_v16, -1e+10  ;;  %v1185_v18 = vpop.f32.mrf.mxu1 }
 0x3db   : > { %v1241_v19 = vsel %vm590_vm2, %v1185_v18, -1e+10  ;;  %v2153_v20 = vpop.f32.mrf.mxu0  ;;  %v1243_v21 = vsel %vm1052_vm3, %v1239_v17, -inf }
 0x3dc   : > { %v2165_v23 = vpop.f32.mrf.mxu1  ;;  %v1249_v24 = vsel %vm1052_vm3, %v1241_v19, -inf  ;;  %1244 = vmax.xlane.f32.xlu1 %v1243_v21 }
 0x3dd   : > { %1250 = vmax.xlane.f32.xlu0 %v1249_v24  ;;  %v1096_v25 = vpop.f32.mrf.mxu0 }
 0x3de   : > { %v1188_v26 = vpop.f32.mrf.mxu1 }
 0x3df   : > { %v2154_v30 = vpop.f32.mrf.mxu0 }
 0x3e0   : > { %v2166_v33 = vpop.f32.mrf.mxu1 }
 0x3e1   : > { %v1139_v34 = vpop.f32.mrf.mxu0 }
 0x3e2   : > { %v1240_v35 = vsel %vm590_vm2, %v1139_v34, -1e+10 }
 0x3e3   : > { %v2159_v36 = vpop.f32.mrf.mxu0  ;;  %v1246_v37 = vsel %vm1052_vm3, %v1240_v35, -inf }
 0x3e4   : > { %1247 = vmax.xlane.f32.xlu0 %v1246_v37 }
 0x3e5   : > { %v1142_v38 = vpop.f32.mrf.mxu0 }
 0x3e7   : > { %v2160_v39 = vpop.f32.mrf.mxu0 }
 0x3e9   : > { %v1231_v40 = vpop.f32.mrf.mxu0 }
 0x3ea   : > { %v1242_v41 = vsel %vm590_vm2, %v1231_v40, -1e+10 }
 0x3eb   : > { %v2171_v43 = vpop.f32.mrf.mxu0  ;;  %v1252_v44 = vsel %vm1052_vm3, %v1242_v41, -inf }
 0x3ec   : > { %1253 = vmax.xlane.f32.xlu1 %v1252_v44 }
 0x3ed   : > { %v1234_v45 = vpop.f32.mrf.mxu0 }
 0x3ef   : > { %v2172_v46 = vpop.f32.mrf.mxu0 }
 0x3fa   : > { %900 = vrot.lane.b32.xlu0 %v2492_v22, %s2337_s28 }
 0x3fd   : > { %902 = vrot.lane.b32.xlu1 %v2503_v27, %s2337_s28 }
 0x465   : > { %v1245_v47 = vpop.xlane.xlu1 %1244 }
 0x466   : > { %v1255_v49 = vsub.f32 %v1239_v17, %v1245_v47  ;;  %v1251_v51 = vpop.xlane.xlu0 %1250 }
 0x467   : > { %v1257_v59 = vsub.f32 %v1241_v19, %v1251_v51 }
 0x468   : > { %v1259_v50 = vmul.f32 1.442695, %v1255_v49 }
 0x469   : > { %v1263_v60 = vmul.f32 1.442695, %v1257_v59 }
 0x46a   : > { %2285 = vpow2.f32 %v1259_v50 }
 0x46d   : > { %v1248_v31 = vpop.xlane.xlu0 %1247 }
 0x46e   : > { %v1256_v32 = vsub.f32 %v1240_v35, %v1248_v31 }
 0x470   : > { %v1261_v52 = vmul.f32 1.442695, %v1256_v32 }
 0x471   : > { %v901_v1 = vpop.permute.xlu0 %900 }
 0x472   : > { %2287 = vpow2.f32 %v1261_v52 }
 0x475   : > { %v1254_v56 = vpop.xlane.xlu1 %1253 }
 0x476   : > { %v1258_v57 = vsub.f32 %v1242_v41, %v1254_v56 }
 0x477   : > { %v2603_v53 = vpop.eup %2285 }
 0x478   : > { %v1267_v54 = vsel %vm1052_vm3, %v2603_v53, 0.0  ;;  %v1265_v58 = vmul.f32 1.442695, %v1258_v57 }
 0x479   : > { %1268 = vadd.xlane.f32.xlu0 %v1267_v54  ;;  %v903_v2 = vpop.permute.xlu1 %902 }
 0x47a   : > { %2289 = vpow2.f32 %v1265_v58 }
 0x47b   : > { %2291 = vpow2.f32 %v1263_v60 }
 0x47f   : > { %v2607_v55 = vpop.eup %2287 }
 0x480   : > { %v1270_v27 = vsel %vm1052_vm3, %v2607_v55, 0.0 }
 0x481   : > { %1271 = vadd.xlane.f32.xlu1 %v1270_v27 }
 0x487   : > { %v2615_v61 = vpop.eup %2289 }
 0x488   : > { %v1276_v62 = vsel %vm1052_vm3, %v2615_v61, 0.0  ;;  %v2619_v63 = vpop.eup %2291 }
 0x48f   : > { %906 = vrot.lane.b32.xlu0 %v2511_v29, %s2337_s28  ;;  %v1273_v29 = vsel %vm1052_vm3, %v2619_v63, 0.0 }
 0x492   : > { %904 = vrot.lane.b32.xlu1 %v2507_v28, %s2337_s28 }
 0x4ae   : > { %1277 = vadd.xlane.f32.xlu0 %v1276_v62 }
 0x4b6   : > { %1274 = vadd.xlane.f32.xlu1 %v1273_v29 }
 0x502   : > { %v1269_v28 = vpop.xlane.xlu0 %1268 }
 0x503   : > { %2293 = vrcp.f32 %v1269_v28 }
 0x506   : > { %v907_v3 = vpop.permute.xlu0 %906 }
 0x507   : > { %v928_v5 = vcombine.low %v903_v2, %v907_v3  ;;  %v929_v6 = vcombine.high %v903_v2, %v907_v3 }
 0x509   : > { %v936_v11 = vrot.slane %v928_v5, %v2524_v42  ;;  %v943_v12 = vrot.slane %v929_v6, %v2524_v42 }
 0x50a   : > { %v1272_v4 = vpop.xlane.xlu1 %1271 }
 0x50b   : > { %2295 = vrcp.f32 %v1272_v4 }
 0x50e   : > { %v905_v7 = vpop.permute.xlu1 %904 }
 0x50f   : > { %v912_v9 = vcombine.low %v901_v1, %v905_v7  ;;  %v913_v10 = vcombine.high %v901_v1, %v905_v7 }
 0x510   : > { %v2294_v41 = vpop.eup %2293 }
 0x511   : > { %v920_v13 = vrot.slane %v912_v9, %v2524_v42  ;;  %v927_v14 = vrot.slane %v913_v10, %v2524_v42  ;;  %v1283_v54 = vmul.f32 %v2294_v41, %v2603_v53 }
 0x513   : > { %v944_v15 = vcombine.low %v920_v13, %v936_v11  ;;  %v945_v16 = vcombine.high %v920_v13, %v936_v11  ;;  %v960_v17 = vcombine.low %v927_v14, %v943_v12  ;;  %v961_v18 = vcombine.high %v927_v14, %v943_v12 }
 0x514   : > { %v1287_v60 = vpack.c.bf16 %v1283_v54, %v1283_v54 }
 0x515   : > { %v952_v19 = vrot.slane %v944_v15, %v2527_v48  ;;  %v959_v20 = vrot.slane %v945_v16, %v2527_v48  ;;  %v968_v21 = vrot.slane %v960_v17, %v2527_v48  ;;  %v975_v23 = vrot.slane %v961_v18, %v2527_v48 }
 0x517   : > { %v980_v24 = vcombine.low %v952_v19, %v959_v20  ;;  %v2071_v25 = vcombine.high %v952_v19, %v959_v20  ;;  %v996_v26 = vcombine.low %v968_v21, %v975_v23  ;;  %v2072_v30 = vcombine.high %v968_v21, %v975_v23 }
 0x518   : > { %v2296_v47 = vpop.eup %2295 }
 0x519   : > { %v987_v33 = vrot.slane %v980_v24, %v2524_v42  ;;  %v995_v34 = vrot.slane %v2071_v25, %v2524_v42  ;;  %v1003_v35 = vrot.slane %v996_v26, %v2524_v42  ;;  %v1011_v36 = vrot.slane %v2072_v30, %v2524_v42 }
 0x51a   : > { %v1284_v27 = vmul.f32 %v2296_v47, %v2607_v55 }
 0x51b   : > { %v1012_v37 = vcombine.low %v987_v33, %v995_v34  ;;  %v1028_v38 = vcombine.low %v1003_v35, %v1011_v36  ;;  %v1013_v39 = vcombine.high %v987_v33, %v995_v34  ;;  %v1029_v40 = vcombine.high %v1003_v35, %v1011_v36 }
 0x51c   : > { %v1288_v62 = vpack.c.bf16 %v1284_v27, %v1284_v27 }
 0x51d   : > { %v1020_v43 = vrot.slane %v1012_v37, %v2527_v48  ;;  %v1036_v44 = vrot.slane %v1028_v38, %v2527_v48  ;;  %v1027_v45 = vrot.slane %v1013_v39, %v2527_v48  ;;  %v1043_v46 = vrot.slane %v1029_v40, %v2527_v48  ;;  %v2271_v39 = vld [vmem:[%s2794_s6 + $0x8] sm:$0xff]  }
 0x51f   : > { %v1044_v49 = vcombine.low %v1020_v43, %v1036_v44  ;;  %v1045_v50 = vcombine.high %v1020_v43, %v1036_v44  ;;  %v1046_v51 = vcombine.low %v1027_v45, %v1043_v46  ;;  %v1047_v31 = vcombine.high %v1027_v45, %v1043_v46 }
 0x521   : > { %v1048_v32 = vpack.c.bf16 %v1044_v49, %v1044_v49  ;;  %v1049_v52 = vpack.c.bf16 %v1045_v50, %v1045_v50  ;;  %v1050_v58 = vpack.c.bf16 %v1046_v51, %v1046_v51  ;;  %v1051_v59 = vpack.c.bf16 %v1047_v31, %v1047_v31  ;;  %v2272_v51 = vld [vmem:[%s2794_s6] sm:$0xff]  }
 0x523   : > { %v1296_v56 = vsel %vm1294_vm4, %v1048_v32, 0  ;;  %v1342_v57 = vsel %vm1294_vm4, %v1049_v52, 0  ;;  %v1388_v53 = vsel %vm1294_vm4, %v1050_v58, 0  ;;  %v1434_v55 = vsel %vm1294_vm4, %v1051_v59, 0 }
 0x524   : > { %2174 = vmatpush3.bf16.msra.mxu1 %v1296_v56  ;;  %2180 = vmatpush3.bf16.msra.mxu0 %v1342_v57 }
 0x525   : > { %2185 = vmatprep.subr.bf16.mxu1 %v2329_v8  ;;  %2191 = vmatprep.subr.bf16.mxu0 %v2329_v8 }
 0x527   : > { %2176 = vmatmul.mubr.msk.bf16.vlgmr.msra.gmra.mxu1 %vm1052_vm3, %v1287_v60  ;;  %2182 = vmatmul.mubr.msk.bf16.vlgmr.msra.gmra.mxu0 %vm1052_vm3, %v1288_v62 }
 0x528   : > { %2186 = vmatpush3.bf16.msra.mxu1 %v1388_v53  ;;  %2192 = vmatpush3.bf16.msra.mxu0 %v1434_v55 }
 0x529   : > { %2193 = vmatprep.mubr.msk.bf16.mxu0 %vm2330_vm1, %v2329_v8  ;;  %2187 = vmatprep.mubr.msk.bf16.mxu1 %vm2330_vm1, %v2329_v8 }
 0x52a   : > { %2197 = vmatprep.subr.bf16.mxu1 %v2329_v8  ;;  %2205 = vmatprep.subr.bf16.mxu0 %v2329_v8 }
 0x537   : > { %v1278_v29 = vpop.xlane.xlu0 %1277 }
 0x538   : > { %2297 = vrcp.f32 %v1278_v29 }
 0x53f   : > { %v1275_v1 = vpop.xlane.xlu1 %1274 }
 0x540   : > { %2299 = vrcp.f32 %v1275_v1 }
 0x545   : > { %v2298_v28 = vpop.eup %2297 }
 0x546   : > { %v1286_v2 = vmul.f32 %v2298_v28, %v2615_v61 }
 0x548   : > { %v1290_v3 = vpack.c.bf16 %v1286_v2, %v1286_v2 }
 0x54a   : > { %2194 = vmatmul.mubr.msk.bf16.vlgmr.msra.gmra.mxu0 %vm1052_vm3, %v1290_v3 }
 0x54b   : > { %2209 = vmatprep.mubr.msk.bf16.mxu0 %vm2330_vm1, %v2329_v8 }
 0x54d   : > { %v2300_v4 = vpop.eup %2299 }
 0x54e   : > { %v1285_v5 = vmul.f32 %v2300_v4, %v2619_v63 }
 0x550   : > { %v1289_v6 = vpack.c.bf16 %v1285_v5, %v1285_v5 }
 0x552   : > { %2188 = vmatmul.mubr.msk.bf16.vlgmr.msra.gmra.mxu1 %vm1052_vm3, %v1289_v6 }
 0x553   : > { %2201 = vmatprep.mubr.msk.bf16.mxu1 %vm2330_vm1, %v2329_v8  ;;  %2198 = vmatpush3.bf16.msra.mxu1 %v2271_v39  ;;  %v2276_v39 = vld [vmem:[%s2800_s12 + $0x30] sm:$0xff]  }
 0x554   : > { %2199 = vmatprep.subr.bf16.mxu1 %v2329_v8 }
 0x557   : > { %2200 = vmatpush3.bf16.msra.mxu1 %v2272_v51 }
 0x558   : > { %2213 = vmatprep.subr.bf16.mxu1 %v2329_v8 }
 0x5e7   : > { %v1332_v7 = vpop.f32.mrf.mxu1  ;;  %v1378_v9 = vpop.f32.mrf.mxu0 }
 0x5e9   : > { %v2177_v10 = vpop.f32.mrf.mxu1  ;;  %v2183_v11 = vpop.f32.mrf.mxu0 }
 0x5eb   : > { %v1335_v61 = vpop.f32.mrf.mxu1  ;;  %v1381_v12 = vpop.f32.mrf.mxu0 }
 0x5ed   : > { %v2178_v13 = vpop.f32.mrf.mxu1  ;;  %v2184_v14 = vpop.f32.mrf.mxu0 }
 0x60a   : > { %v1470_v15 = vpop.f32.mrf.mxu0 }
 0x60b   : > { %v1492_v19 = vcombine.low %v1378_v9, %v1470_v15  ;;  %v1493_v63 = vcombine.high %v1378_v9, %v1470_v15  ;;  %v2106_v15 = vpack.c.bf16 %v2492_v22, %v2492_v22  ;;  %v2273_v22 = vld [vmem:[%s2798_s10 + $0x8] sm:$0xff]  }
 0x60c   : > { %v2195_v16 = vpop.f32.mrf.mxu0  ;;  %2206 = vmatpush3.bf16.msra.mxu0 %v2273_v22 }
 0x60d   : > { %v1500_v25 = vrot.slane %v1492_v19, %v2524_v42  ;;  %v1507_v26 = vrot.slane %v1493_v63, %v2524_v42  ;;  %2207 = vmatprep.subr.bf16.mxu0 %v2329_v8 }
 0x60e   : > { %v1473_v17 = vpop.f32.mrf.mxu0 }
 0x610   : > { %v2196_v18 = vpop.f32.mrf.mxu0 }
 0x612   : > { %v1424_v20 = vpop.f32.mrf.mxu1 }
 0x613   : > { %v1476_v21 = vcombine.low %v1332_v7, %v1424_v20  ;;  %v1477_v23 = vcombine.high %v1332_v7, %v1424_v20  ;;  %v2083_v7 = vld [vmem:[%s2795_s7] ss:$0 sm:$0xff] }
 0x614   : > { %v2189_v24 = vpop.f32.mrf.mxu1  ;;  %v2274_v20 = vld [vmem:[%s2798_s10] sm:$0xff]  }
 0x615   : > { %v1484_v30 = vrot.slane %v1476_v21, %v2524_v42  ;;  %v1491_v33 = vrot.slane %v1477_v23, %v2524_v42  ;;  %2208 = vmatpush3.bf16.msra.mxu0 %v2274_v20 }
 0x616   : > { %v1427_v34 = vpop.f32.mrf.mxu1 }
 0x617   : > { %v1508_v35 = vcombine.low %v1484_v30, %v1500_v25  ;;  %v1509_v36 = vcombine.high %v1484_v30, %v1500_v25  ;;  %v1524_v37 = vcombine.low %v1491_v33, %v1507_v26  ;;  %v1525_v38 = vcombine.high %v1491_v33, %v1507_v26  ;;  %v2087_v30 = vld [vmem:[%s2796_s8] ss:$0 sm:$0xff] }
 0x618   : > { %v2190_v40 = vpop.f32.mrf.mxu1  ;;  %v2088_v34 = vld [vmem:[%s2797_s9] ss:$0 sm:$0xff] }
 0x619   : > { %v1516_v41 = vrot.slane %v1508_v35, %v2527_v48  ;;  %v1523_v43 = vrot.slane %v1509_v36, %v2527_v48  ;;  %v1532_v44 = vrot.slane %v1524_v37, %v2527_v48  ;;  %v1539_v45 = vrot.slane %v1525_v38, %v2527_v48  ;;  %v2275_v38 = vld [vmem:[%s2800_s12 + $0x38] sm:$0xff]   ;;  %v2277_v40 = vld [vmem:[%s2800_s12 + $0x28] sm:$0xff]  }
 0x61b   : > { %v1544_v46 = vcombine.low %v1516_v41, %v1523_v43  ;;  %v2081_v47 = vcombine.high %v1516_v41, %v1523_v43  ;;  %v1560_v49 = vcombine.low %v1532_v44, %v1539_v45  ;;  %v2082_v50 = vcombine.high %v1532_v44, %v1539_v45  ;;  %v2278_v41 = vld [vmem:[%s2800_s12 + $0x20] sm:$0xff]   ;;  %v2279_v43 = vld [vmem:[%s2800_s12 + $0x18] sm:$0xff]   ;;  %v2280_v44 = vld [vmem:[%s2800_s12 + $0x10] sm:$0xff]  }
 0x61c   : > { %v2281_v45 = vld [vmem:[%s2800_s12 + $0x8] sm:$0xff]  }
 0x61d   : > { %v1551_v31 = vrot.slane %v1544_v46, %v2524_v42  ;;  %v1559_v32 = vrot.slane %v2081_v47, %v2524_v42  ;;  %v1567_v52 = vrot.slane %v1560_v49, %v2524_v42  ;;  %v1575_v54 = vrot.slane %v2082_v50, %v2524_v42  ;;  %v2282_v46 = vld [vmem:[%s2800_s12] sm:$0xff]  }
 0x61e   : > { %v2089_v47 = vld [vmem:[%s2799_s11] ss:$0 sm:$0xff] }
 0x61f   : > { %v1577_v27 = vcombine.high %v1551_v31, %v1559_v32  ;;  %v1593_v56 = vcombine.high %v1567_v52, %v1575_v54  ;;  %v1576_v57 = vcombine.low %v1551_v31, %v1559_v32  ;;  %v1592_v58 = vcombine.low %v1567_v52, %v1575_v54 }
 0x621   : > { %v1591_v59 = vrot.slane %v1577_v27, %v2527_v48  ;;  %v1607_v60 = vrot.slane %v1593_v56, %v2527_v48  ;;  %v1584_v62 = vrot.slane %v1576_v57, %v2527_v48  ;;  %v1600_v53 = vrot.slane %v1592_v58, %v2527_v48 }
 0x623   : > { %v1610_v55 = vcombine.low %v1591_v59, %v1607_v60  ;;  %v1609_v29 = vcombine.high %v1584_v62, %v1600_v53  ;;  %v1608_v1 = vcombine.low %v1584_v62, %v1600_v53  ;;  %v1611_v42 = vcombine.high %v1591_v59, %v1607_v60  ;;  %v2093_v53 = vld [vmem:[%s2801_s13] ss:$0 sm:$0xff] }
 0x625   : > { %1617 = vrot.lane.b32.xlu1 %v1610_v55, %s2338_s21  ;;  %1613 = vrot.lane.b32.xlu0 %v1609_v29, %s2339_s22  ;;  %s2056_s21 = sshll.u32 %s460_s18, 3  ;;  %s470_s18 = scalar_lea.vmem %s2802_s14, %s2057_s26 }
 0x626   : > { %s2704_s22 = scalar_lea.vmem [#allocation2], %s2056_s21  ;;  %s2103_s21 = sshll.u32 (%p2446_p4), %s2434_s19, 2 }
 0x627   : > { %s1931_s26 = scalar_lea.vmem (%p2446_p4), %s2803_s15, %s2103_s21 }
 0x629   : > { %1621 = vrot.lane.b32.xlu1 %v1611_v42, %s2340_s29 }
 0x697   : > { %v1618_v28 = vpop.permute.xlu1 %1617  ;;  %v1614_v2 = vpop.permute.xlu0 %1613 }
 0x698   : > { %v1624_v3 = vsel %vm1052_vm3, %v1608_v1, %v1614_v2 }
 0x699   : > { %v1626_v5 = vsel %vm1625_vm5, %v1624_v3, %v1618_v28 }
 0x69b   : > { %v1622_v4 = vpop.permute.xlu1 %1621 }
 0x69c   : > { %v1628_v48 = vsel %vm1627_vm6, %v1626_v5, %v1622_v4 }
 0x69d   : > { %v1629_v6 = vpack.c.bf16 %v1628_v48, %v1628_v48 }
 0x69f   : > { %2202 = vmatmul.mubr.msk.bf16.vlgmr.msra.gmra.mxu1 %vm475_vm0, %v1629_v6 }
 0x6a0   : > { %2229 = vmatprep.mubr.msk.bf16.mxu1 %vm2330_vm1, %v2329_v8  ;;  %2214 = vmatpush3.bf16.msra.mxu1 %v2275_v38 }
 0x6a1   : > { %2215 = vmatprep.subr.bf16.mxu1 %v2329_v8 }
 0x6a4   : > { %2216 = vmatpush3.bf16.msra.mxu1 %v2276_v39 }
 0x6a5   : > { %2217 = vmatprep.subr.bf16.mxu1 %v2329_v8 }
 0x6a8   : > { %2218 = vmatpush3.bf16.msra.mxu1 %v2277_v40 }
 0x6a9   : > { %2219 = vmatprep.subr.bf16.mxu1 %v2329_v8 }
 0x6ac   : > { %2220 = vmatpush3.bf16.msra.mxu1 %v2278_v41 }
 0x6ad   : > { %2221 = vmatprep.subr.bf16.mxu1 %v2329_v8 }
 0x6b0   : > { %2222 = vmatpush3.bf16.msra.mxu1 %v2279_v43 }
 0x6b1   : > { %2223 = vmatprep.subr.bf16.mxu1 %v2329_v8 }
 0x6b4   : > { %2224 = vmatpush3.bf16.msra.mxu1 %v2280_v44 }
 0x6b5   : > { %2225 = vmatprep.subr.bf16.mxu1 %v2329_v8 }
 0x6b8   : > { %2226 = vmatpush3.bf16.msra.mxu1 %v2281_v45 }
 0x6b9   : > { %2227 = vmatprep.subr.bf16.mxu1 %v2329_v8 }
 0x6bc   : > { %2228 = vmatpush3.bf16.msra.mxu1 %v2282_v46 }
 0x75f   : > { %v1690_v9 = vpop.f32.mrf.mxu1 }
 0x760   : > { %v1691_v10 = vadd.f32 %v2083_v7, %v1690_v9 }
 0x761   : > { %v2203_v11 = vpop.f32.mrf.mxu1 }
 0x762   : > { %v2695_v61 = vadd.f32 %v1691_v10, %v2460_v0 }
 0x763   : > { %v1693_v12 = vpop.f32.mrf.mxu1 }
 0x764   : > { %v1699_v13 = vsel %vm475_vm0, %v2695_v61, 0.0 }
 0x765   : > { %1700 = vadd.xlane.f32.xlu0 %v1699_v13  ;;  %v2204_v14 = vpop.f32.mrf.mxu1 }
 0x77b   : > { %575 = vrot.lane.b32.xlu0 %v2106_v15, %s2334_s27 }
 0x7ee   : > { %v1701_v16 = vpop.xlane.xlu0 %1700 }
 0x7ef   : > { %v1702_v17 = vmul.f32 0.03125, %v1701_v16 }
 0x7f1   : > { %v1703_v18 = vsub.f32 %v2695_v61, %v1702_v17 }
 0x7f2   : > { %v576_v0 = vpop.permute.xlu0 %575 }
 0x7f3   : > { %579 = vst.msk [vmem:[%s2704_s22] sm:$0xf] %vm578_vm7, %v576_v0  ;;  %v1704_v19 = vmul.f32 %v1703_v18, %v1703_v18 }
 0x7f5   : > { %v1705_v63 = vsel %vm475_vm0, %v1704_v19, 0.0 }
 0x7f6   : > { %1706 = vadd.xlane.f32.xlu1 %v1705_v63 }
 0x7fa   : > { %v1948_v3 = vld [vmem:[%s2704_s22] sm:$0xf] (%p2446_p4) }
 0x7fb   : > { %1949 = vst [vmem:[%s1931_s26] sm:$0xf] (%p2446_p4), %v1948_v3 }
 0x807   : > { %580 = vrot.lane.b32.xlu1 %v2106_v15, %s2337_s28 }
 0x87f   : > { %v1707_v21 = vpop.xlane.xlu1 %1706 }
 0x880   : > { %v1708_v23 = vmul.f32 0.03125, %v1707_v21 }
 0x882   : > { %v1709_v24 = vadd.f32 1e-05, %v1708_v23 }
 0x883   : > { %v581_v25 = vpop.permute.xlu1 %580 }
 0x884   : > { %2301 = vrsqrt.f32 %v1709_v24  ;;  %2066 = vst.msk [vmem:[%s2704_s22 + $0x4] sm:$0xf] %vm578_vm7, %v581_v25 }
 0x88b   : > { %v1950_v4 = vld [vmem:[%s2704_s22 + $0x4] sm:$0xf] (%p2446_p4) }
 0x88c   : > { %1951 = vst [vmem:[%s1931_s26 + $0x8] sm:$0xf] (%p2446_p4), %v1950_v4 }
 0x891   : > { %v2302_v26 = vpop.eup %2301 }
 0x892   : > { %v1711_v33 = vmul.f32 %v2302_v26, %v1703_v18 }
 0x894   : > { %v1718_v35 = vmul.f32 %v2087_v30, %v1711_v33 }
 0x896   : > { %v1725_v36 = vadd.f32 %v2088_v34, %v1718_v35 }
 0x898   : > { %v1726_v37 = vpack.c.bf16 %v1725_v36, %v1725_v36 }
 0x89a   : > { %2210 = vmatmul.mubr.msk.bf16.vlgmr.msra.gmra.mxu0 %vm475_vm0, %v1726_v37 }
 0x95a   : > { %v1787_v49 = vpop.f32.mrf.mxu0 }
 0x95b   : > { %v1788_v50 = vadd.f32 %v2089_v47, %v1787_v49 }
 0x95c   : > { %v2211_v51 = vpop.f32.mrf.mxu0 }
 0x95d   : > { %v1794_v31 = vmul.f32 %v1788_v50, %v1788_v50  ;;  %v1793_v59 = vmul.f32 0.5, %v1788_v50 }
 0x95e   : > { %v1790_v32 = vpop.f32.mrf.mxu0 }
 0x95f   : > { %v1795_v52 = vmul.f32 %v1794_v31, %v1788_v50 }
 0x960   : > { %v2212_v54 = vpop.f32.mrf.mxu0 }
 0x961   : > { %v1796_v27 = vmul.f32 0.044715, %v1795_v52 }
 0x963   : > { %v1797_v56 = vadd.f32 %v1796_v27, %v1788_v50 }
 0x965   : > { %v1798_v57 = vmul.f32 0.7978846, %v1797_v56 }
 0x967   : > { %2303 = vtanh.f32 %v1798_v57 }
 0x974   : > { %v2304_v58 = vpop.eup %2303 }
 0x975   : > { %v1800_v8 = vadd.f32 1.0, %v2304_v58 }
 0x977   : > { %v1801_v60 = vmul.f32 %v1800_v8, %v1793_v59 }
 0x979   : > { %v1802_v62 = vpack.c.bf16 %v1801_v60, %v1801_v60 }
 0x97b   : > { %2230 = vmatmul.mubr.bf16.vlgmr.msra.gmra.mxu1 %v1802_v62 }
 0xa3b   : > { %v1908_v55 = vpop.f32.mrf.mxu1 }
 0xa3c   : > { %v1909_v29 = vadd.f32 %v2093_v53, %v1908_v55 }
 0xa3d   : > { %v2231_v1 = vpop.f32.mrf.mxu1  ;;  %1929 = sbr.rel (!%p2446_p4) target bundleno = 2626 (0xa42), region = 80 }
 0xa3e   : > { %v1914_v42 = vadd.f32 %v1909_v29, %v2695_v61 }
 0xa3f   : > { %v1911_v28 = vpop.f32.mrf.mxu1 }
 0xa40   : > { %1915 = vst.msk [vmem:[%s470_s18] sm:$0xff] %vm475_vm0, %v1914_v42 }
 0xa41   : > { %v2232_v2 = vpop.f32.mrf.mxu1 }
 0xa42 PF: > { %p23_p8 = scmp.ge.s32.totalorder %s2436_s20, 4   ;;  %s2805_s17 = smov %s2323_s1 }
 0xa43   : > { %s2806_s1 = smov %s2444_s23  ;;  %s2807_s18 = smov %s2436_s20 }
 0xa44   :  { %25 = sbr.rel (!%p23_p8) target bundleno = 2 (0x2), region = 156 }

</bundles_post_ra>
